<compile_context>
chip_gen: v7x
topology: tpu7x:2x2x1
jax: 0.10.0
libtpu: 0.0.40
codegen_flags: <defaults>
</compile_context>

<pallas_src>
import jax
import jax.numpy as jnp
from jax.experimental import pallas as pl
from jax.experimental.pallas import tpu as pltpu


def _leaky(v):
    return jnp.where(v > 0, v, 0.01 * v)


def _sigmoid(v):
    # sigmoid via tanh: one EUP op per gate, no full-precision divide on the
    # serialized recurrence critical path.
    return 0.5 * (jnp.tanh(0.5 * v) + 1.0)


def encdec_kernel(x_ref, w1_ref, b1_ref, w2_ref, b2_ref,
                  wihT_ref, whhT_ref, bih_ref, bhh_ref, out_ref):
    # x_ref   : (C0, W, H+4)    VMEM  (H zero-padded by 2 on each side)
    # w1_ref  : (C1*C0*3,)      SMEM  flat conv1 weights, index (co*C0+ci)*3+kh
    # b1_ref  : (C1,)           SMEM
    # w2_ref  : (C2*C1*3,)      SMEM
    # b2_ref  : (C2,)           SMEM
    # wihT_ref: (C2*H, 3*hid)   VMEM  GRU W_ih transposed
    # whhT_ref: (hid, 3*hid)    VMEM  GRU W_hh transposed
    # bih_ref : (1, 3*hid)      VMEM
    # bhh_ref : (1, 3*hid)      VMEM
    # out_ref : (W, hid)        VMEM  (one batch element; wrapper permutes to (hid, W))
    C0 = x_ref.shape[0]
    W = x_ref.shape[1]
    H = x_ref.shape[2] - 4
    He = H + 2                       # extended conv1 output width == conv2 input width
    C1 = b1_ref.shape[0]
    C2 = b2_ref.shape[0]
    hid = whhT_ref.shape[0]

    x = x_ref[...]                                               # (C0, W, H+4)
    # hoisted shifted views used by conv1 (static lane slices, one vreg each)
    xs = [[x[ci, :, kh:kh + He] for kh in range(3)] for ci in range(C0)]

    # ---- conv1 (evaluated on the H+2 extended window) + LeakyReLU ----
    # Column j of the extended output equals the true conv1 output at h = j-1;
    # columns 0 and H+1 are masked to zero, which *is* conv2's (1,0) zero padding.
    col = jax.lax.broadcasted_iota(jnp.int32, (W, He), 1)
    interior = jnp.logical_and(col >= 1, col <= H)
    y1p = []
    for co in range(C1):
        acc = jnp.zeros((W, He), jnp.float32) + b1_ref[co]
        for ci in range(C0):
            for kh in range(3):
                acc = acc + w1_ref[(co * C0 + ci) * 3 + kh] * xs[ci][kh]
        y1p.append(jnp.where(interior, _leaky(acc), 0.0))        # (W, H+2)

    # hoisted shifted views used by conv2
    y1s = [[v[:, kh:kh + H] for kh in range(3)] for v in y1p]

    # ---- conv2 + LeakyReLU ----
    y2 = []
    for co in range(C2):
        acc = jnp.zeros((W, H), jnp.float32) + b2_ref[co]
        for ci in range(C1):
            for kh in range(3):
                acc = acc + w2_ref[(co * C1 + ci) * 3 + kh] * y1s[ci][kh]
        y2.append(_leaky(acc))                                   # (W, H)

    # ---- GRU input projection: one fused K = C2*H (=300) MXU matmul ----
    # Feature order matches PyTorch view(n, c*h, w): feature index = c*H + h.
    feat = jnp.concatenate(y2, axis=1)                           # (W, C2*H)
    gi_all = jnp.dot(feat, wihT_ref[...],
                     preferred_element_type=jnp.float32) + bih_ref[...]   # (W, 3*hid)

    # ---- single-layer GRU over seq = W (PyTorch gate order: r, z, n; h0 = 0) ----
    whhT = whhT_ref[...]                                         # (hid, 3*hid)
    bhh = bhh_ref[...]                                           # (1, 3*hid)
    h = jnp.zeros((1, hid), jnp.float32)
    for t in range(W):                                           # W is small & static
        gi = gi_all[t:t + 1, :]                                  # (1, 3*hid) sublane slice
        if t == 0:
            gh = bhh                                             # h == 0 at t == 0
        else:
            gh = jnp.dot(h, whhT, preferred_element_type=jnp.float32) + bhh
        r = _sigmoid(gi[:, 0:hid] + gh[:, 0:hid])
        z = _sigmoid(gi[:, hid:2 * hid] + gh[:, hid:2 * hid])
        n = jnp.tanh(gi[:, 2 * hid:3 * hid] + r * gh[:, 2 * hid:3 * hid])
        if t == 0:
            h = (1.0 - z) * n
        else:
            h = (1.0 - z) * n + z * h
        out_ref[t:t + 1, :] = h                                  # row t of (W, hid)


def encoder_decoder_forward(x, w1, b1, w2, b2, wih, whh, bih, bhh):
    """x: (N, C0, H, W) float32. Returns (N, hid, W) == PyTorch EncoderDecoder output."""
    N, C0, H, W = x.shape
    C1 = w1.shape[0]
    C2 = w2.shape[0]
    hid = whh.shape[1]

    # H on lanes, W on sublanes; pad H by 2 so conv1's extended window also
    # provides conv2's zero padding (edge columns are masked inside the kernel).
    xT = jnp.transpose(x, (0, 1, 3, 2)).astype(jnp.float32)      # (N, C0, W, H)
    xpad = jnp.pad(xT, ((0, 0), (0, 0), (0, 0), (2, 2)))         # (N, C0, W, H+4)

    w1_flat = w1.reshape(-1).astype(jnp.float32)
    w2_flat = w2.reshape(-1).astype(jnp.float32)
    wihT = jnp.transpose(wih).astype(jnp.float32)                # (C2*H, 3*hid)
    whhT = jnp.transpose(whh).astype(jnp.float32)                # (hid, 3*hid)
    bih_row = bih.reshape(1, 3 * hid).astype(jnp.float32)
    bhh_row = bhh.reshape(1, 3 * hid).astype(jnp.float32)

    out_wh = pl.pallas_call(
        encdec_kernel,
        out_shape=jax.ShapeDtypeStruct((N, W, hid), jnp.float32),
        grid=(N,),
        in_specs=[
            pl.BlockSpec((None, C0, W, H + 4), lambda b: (b, 0, 0, 0)),
            pl.BlockSpec(memory_space=pltpu.MemorySpace.SMEM),   # w1 (flat)
            pl.BlockSpec(memory_space=pltpu.MemorySpace.SMEM),   # b1
            pl.BlockSpec(memory_space=pltpu.MemorySpace.SMEM),   # w2 (flat)
            pl.BlockSpec(memory_space=pltpu.MemorySpace.SMEM),   # b2
            pl.BlockSpec((C2 * H, 3 * hid), lambda b: (0, 0)),   # W_ih^T
            pl.BlockSpec((hid, 3 * hid), lambda b: (0, 0)),      # W_hh^T
            pl.BlockSpec((1, 3 * hid), lambda b: (0, 0)),        # b_ih
            pl.BlockSpec((1, 3 * hid), lambda b: (0, 0)),        # b_hh
        ],
        out_specs=pl.BlockSpec((None, W, hid), lambda b: (b, 0, 0)),
        compiler_params=pltpu.CompilerParams(
            dimension_semantics=("parallel",)),                  # batch across TCs on v7x
    )(xpad, w1_flat, b1.astype(jnp.float32), w2_flat, b2.astype(jnp.float32),
      wihT, whhT, bih_row, bhh_row)

    # PyTorch returns output.permute([0, 2, 1]) == (N, hid, W)
    return jnp.transpose(out_wh, (0, 2, 1))


# ------------------------- plain-JAX reference (for validation) -------------------------
def ref_forward(x, w1, b1, w2, b2, wih, whh, bih, bhh):
    N, C0, H, W = x.shape
    hid = whh.shape[1]
    hp = jax.lax.Precision.HIGHEST

    def conv(inp, w, b):
        Hh = inp.shape[2]
        xp = jnp.pad(inp, ((0, 0), (0, 0), (1, 1), (0, 0)))
        acc = jnp.zeros((inp.shape[0], w.shape[0], Hh, inp.shape[3]), jnp.float32)
        for kh in range(3):
            acc = acc + jnp.einsum('oi,nihw->nohw', w[:, :, kh],
                                   xp[:, :, kh:kh + Hh, :], precision=hp)
        return acc + b[None, :, None, None]

    y1 = _leaky(conv(x, w1, b1))
    y2 = _leaky(conv(y1, w2, b2))
    n_, c_, h_, w_ = y2.shape
    feat = y2.reshape(n_, c_ * h_, w_).transpose(0, 2, 1)      # (N, W, c*h) == PyTorch view+permute

    def step(h, xt):
        gi = jnp.dot(xt, wih.T, precision=hp) + bih
        gh = jnp.dot(h, whh.T, precision=hp) + bhh
        r = jax.nn.sigmoid(gi[:, :hid] + gh[:, :hid])
        z = jax.nn.sigmoid(gi[:, hid:2 * hid] + gh[:, hid:2 * hid])
        nn_ = jnp.tanh(gi[:, 2 * hid:] + r * gh[:, 2 * hid:])
        hn = (1.0 - z) * nn_ + z * h
        return hn, hn

    h0 = jnp.zeros((N, hid), jnp.float32)
    _, outs = jax.lax.scan(step, h0, jnp.transpose(feat, (1, 0, 2)))   # (W, N, hid)
    return jnp.transpose(outs, (1, 2, 0))                              # (N, hid, W)


if __name__ == "__main__":
    # Module hyper-params: input_size=C0, output_size=hid (GRU hidden).
    # Decoder hard-codes GRU input_size=300 = 6*H  =>  spatial H must be 50.
    N, C0, H, W = 2, 4, 50, 8
    C1, C2 = 3, 6
    hid = 16                      # output_size
    F = C2 * H                    # 300 == Decoder GRU input_size
    assert F == 300

    key = jax.random.PRNGKey(0)
    ks = jax.random.split(key, 9)
    w1 = jax.random.normal(ks[0], (C1, C0, 3), jnp.float32) * 0.3   # conv1 (kw=1 dim dropped)
    b1 = jax.random.normal(ks[1], (C1,), jnp.float32) * 0.1
    w2 = jax.random.normal(ks[2], (C2, C1, 3), jnp.float32) * 0.3   # conv2
    b2 = jax.random.normal(ks[3], (C2,), jnp.float32) * 0.1
    wih = jax.random.normal(ks[4], (3 * hid, F), jnp.float32) * 0.05   # GRU weight_ih_l0 (r,z,n)
    whh = jax.random.normal(ks[5], (3 * hid, hid), jnp.float32) * 0.1  # GRU weight_hh_l0
    bih = jax.random.normal(ks[6], (3 * hid,), jnp.float32) * 0.1
    bhh = jax.random.normal(ks[7], (3 * hid,), jnp.float32) * 0.1
    x = jax.random.normal(ks[8], (N, C0, H, W), jnp.float32)

    out = encoder_decoder_forward(x, w1, b1, w2, b2, wih, whh, bih, bhh)
    out = jax.block_until_ready(out)
    assert out.shape == (N, hid, W)

    ref = ref_forward(x, w1, b1, w2, b2, wih, whh, bih, bhh)
    max_err = float(jnp.max(jnp.abs(out - ref)))
    assert max_err < 1e-3, f"mismatch vs reference, max abs err = {max_err}"
    print("KERNEL_OK")
</pallas_src>

<mosaic_0001>
module attributes {stable_mosaic.version = 11 : i64} {
  func.func @encdec_kernel(%arg0: i32, %arg1: memref<1x4x8x54xf32, #tpu.memory_space<vmem>>, %arg2: memref<36xf32, #tpu.memory_space<smem>>, %arg3: memref<3xf32, #tpu.memory_space<smem>>, %arg4: memref<54xf32, #tpu.memory_space<smem>>, %arg5: memref<6xf32, #tpu.memory_space<smem>>, %arg6: memref<300x48xf32, #tpu.memory_space<vmem>>, %arg7: memref<16x48xf32, #tpu.memory_space<vmem>>, %arg8: memref<1x48xf32, #tpu.memory_space<vmem>>, %arg9: memref<1x48xf32, #tpu.memory_space<vmem>>, %arg10: memref<1x8x16xf32, #tpu.memory_space<vmem>>) attributes {dimension_semantics = [#tpu.dimension_semantics<parallel>], iteration_bounds = array<i64: 2>, scalar_prefetch = 0 : i64, scratch_operands = 0 : i64, tpu.core_type = #tpu.core_type<tc>, window_params = [{transform_indices = @transform_0, window_bounds = array<i64: 1, 4, 8, 54>}, {transform_indices = @transform_1, window_bounds = array<i64: 36>}, {transform_indices = @transform_2, window_bounds = array<i64: 3>}, {transform_indices = @transform_3, window_bounds = array<i64: 54>}, {transform_indices = @transform_4, window_bounds = array<i64: 6>}, {pipeline_mode = #tpu.pipeline_mode<synchronous>, transform_indices = @transform_5, window_bounds = array<i64: 300, 48>}, {pipeline_mode = #tpu.pipeline_mode<synchronous>, transform_indices = @transform_6, window_bounds = array<i64: 16, 48>}, {pipeline_mode = #tpu.pipeline_mode<synchronous>, transform_indices = @transform_7, window_bounds = array<i64: 1, 48>}, {pipeline_mode = #tpu.pipeline_mode<synchronous>, transform_indices = @transform_8, window_bounds = array<i64: 1, 48>}, {transform_indices = @transform_9, window_bounds = array<i64: 1, 8, 16>}]} {
    %c0 = arith.constant 0 : index
    %c0_0 = arith.constant 0 : index
    %c0_1 = arith.constant 0 : index
    %c0_2 = arith.constant 0 : index
    %0 = vector.load %arg1[%c0, %c0_0, %c0_1, %c0_2] : memref<1x4x8x54xf32, #tpu.memory_space<vmem>>, vector<1x4x8x54xf32>
    %1 = vector.shape_cast %0 : vector<1x4x8x54xf32> to vector<4x8x54xf32>
    %2 = vector.extract_strided_slice %1 {offsets = [0, 0, 0], sizes = [1, 8, 52], strides = [1, 1, 1]} : vector<4x8x54xf32> to vector<1x8x52xf32>
    %3 = vector.shape_cast %2 : vector<1x8x52xf32> to vector<8x52xf32>
    %4 = vector.extract_strided_slice %1 {offsets = [0, 0, 1], sizes = [1, 8, 52], strides = [1, 1, 1]} : vector<4x8x54xf32> to vector<1x8x52xf32>
    %5 = vector.shape_cast %4 : vector<1x8x52xf32> to vector<8x52xf32>
    %6 = vector.extract_strided_slice %1 {offsets = [0, 0, 2], sizes = [1, 8, 52], strides = [1, 1, 1]} : vector<4x8x54xf32> to vector<1x8x52xf32>
    %7 = vector.shape_cast %6 : vector<1x8x52xf32> to vector<8x52xf32>
    %8 = vector.extract_strided_slice %1 {offsets = [1, 0, 0], sizes = [1, 8, 52], strides = [1, 1, 1]} : vector<4x8x54xf32> to vector<1x8x52xf32>
    %9 = vector.shape_cast %8 : vector<1x8x52xf32> to vector<8x52xf32>
    %10 = vector.extract_strided_slice %1 {offsets = [1, 0, 1], sizes = [1, 8, 52], strides = [1, 1, 1]} : vector<4x8x54xf32> to vector<1x8x52xf32>
    %11 = vector.shape_cast %10 : vector<1x8x52xf32> to vector<8x52xf32>
    %12 = vector.extract_strided_slice %1 {offsets = [1, 0, 2], sizes = [1, 8, 52], strides = [1, 1, 1]} : vector<4x8x54xf32> to vector<1x8x52xf32>
    %13 = vector.shape_cast %12 : vector<1x8x52xf32> to vector<8x52xf32>
    %14 = vector.extract_strided_slice %1 {offsets = [2, 0, 0], sizes = [1, 8, 52], strides = [1, 1, 1]} : vector<4x8x54xf32> to vector<1x8x52xf32>
    %15 = vector.shape_cast %14 : vector<1x8x52xf32> to vector<8x52xf32>
    %16 = vector.extract_strided_slice %1 {offsets = [2, 0, 1], sizes = [1, 8, 52], strides = [1, 1, 1]} : vector<4x8x54xf32> to vector<1x8x52xf32>
    %17 = vector.shape_cast %16 : vector<1x8x52xf32> to vector<8x52xf32>
    %18 = vector.extract_strided_slice %1 {offsets = [2, 0, 2], sizes = [1, 8, 52], strides = [1, 1, 1]} : vector<4x8x54xf32> to vector<1x8x52xf32>
    %19 = vector.shape_cast %18 : vector<1x8x52xf32> to vector<8x52xf32>
    %20 = vector.extract_strided_slice %1 {offsets = [3, 0, 0], sizes = [1, 8, 52], strides = [1, 1, 1]} : vector<4x8x54xf32> to vector<1x8x52xf32>
    %21 = vector.shape_cast %20 : vector<1x8x52xf32> to vector<8x52xf32>
    %22 = vector.extract_strided_slice %1 {offsets = [3, 0, 1], sizes = [1, 8, 52], strides = [1, 1, 1]} : vector<4x8x54xf32> to vector<1x8x52xf32>
    %23 = vector.shape_cast %22 : vector<1x8x52xf32> to vector<8x52xf32>
    %24 = vector.extract_strided_slice %1 {offsets = [3, 0, 2], sizes = [1, 8, 52], strides = [1, 1, 1]} : vector<4x8x54xf32> to vector<1x8x52xf32>
    %25 = vector.shape_cast %24 : vector<1x8x52xf32> to vector<8x52xf32>
    %26 = tpu.iota {dimensions = array<i32: 1>} : vector<8x52xi32>
    %c1_i32 = arith.constant 1 : i32
    %27 = vector.broadcast %c1_i32 : i32 to vector<8x52xi32>
    %28 = arith.cmpi sge, %26, %27 : vector<8x52xi32>
    %c50_i32 = arith.constant 50 : i32
    %29 = vector.broadcast %c50_i32 : i32 to vector<8x52xi32>
    %30 = arith.cmpi sle, %26, %29 : vector<8x52xi32>
    %31 = arith.andi %28, %30 : vector<8x52xi1>
    %cst = arith.constant 0.000000e+00 : f32
    %32 = vector.broadcast %cst : f32 to vector<8x52xf32>
    %c0_3 = arith.constant 0 : index
    %33 = memref.load %arg3[%c0_3] : memref<3xf32, #tpu.memory_space<smem>>
    %34 = vector.broadcast %33 : f32 to vector<8x52xf32>
    %35 = arith.addf %32, %34 : vector<8x52xf32>
    %c0_4 = arith.constant 0 : index
    %36 = memref.load %arg2[%c0_4] : memref<36xf32, #tpu.memory_space<smem>>
    %37 = vector.broadcast %36 : f32 to vector<8x52xf32>
    %38 = arith.mulf %37, %3 : vector<8x52xf32>
    %39 = arith.addf %35, %38 : vector<8x52xf32>
    %c1 = arith.constant 1 : index
    %40 = memref.load %arg2[%c1] : memref<36xf32, #tpu.memory_space<smem>>
    %41 = vector.broadcast %40 : f32 to vector<8x52xf32>
    %42 = arith.mulf %41, %5 : vector<8x52xf32>
    %43 = arith.addf %39, %42 : vector<8x52xf32>
    %c2 = arith.constant 2 : index
    %44 = memref.load %arg2[%c2] : memref<36xf32, #tpu.memory_space<smem>>
    %45 = vector.broadcast %44 : f32 to vector<8x52xf32>
    %46 = arith.mulf %45, %7 : vector<8x52xf32>
    %47 = arith.addf %43, %46 : vector<8x52xf32>
    %c3 = arith.constant 3 : index
    %48 = memref.load %arg2[%c3] : memref<36xf32, #tpu.memory_space<smem>>
    %49 = vector.broadcast %48 : f32 to vector<8x52xf32>
    %50 = arith.mulf %49, %9 : vector<8x52xf32>
    %51 = arith.addf %47, %50 : vector<8x52xf32>
    %c4 = arith.constant 4 : index
    %52 = memref.load %arg2[%c4] : memref<36xf32, #tpu.memory_space<smem>>
    %53 = vector.broadcast %52 : f32 to vector<8x52xf32>
    %54 = arith.mulf %53, %11 : vector<8x52xf32>
    %55 = arith.addf %51, %54 : vector<8x52xf32>
    %c5 = arith.constant 5 : index
    %56 = memref.load %arg2[%c5] : memref<36xf32, #tpu.memory_space<smem>>
    %57 = vector.broadcast %56 : f32 to vector<8x52xf32>
    %58 = arith.mulf %57, %13 : vector<8x52xf32>
    %59 = arith.addf %55, %58 : vector<8x52xf32>
    %c6 = arith.constant 6 : index
    %60 = memref.load %arg2[%c6] : memref<36xf32, #tpu.memory_space<smem>>
    %61 = vector.broadcast %60 : f32 to vector<8x52xf32>
    %62 = arith.mulf %61, %15 : vector<8x52xf32>
    %63 = arith.addf %59, %62 : vector<8x52xf32>
    %c7 = arith.constant 7 : index
    %64 = memref.load %arg2[%c7] : memref<36xf32, #tpu.memory_space<smem>>
    %65 = vector.broadcast %64 : f32 to vector<8x52xf32>
    %66 = arith.mulf %65, %17 : vector<8x52xf32>
    %67 = arith.addf %63, %66 : vector<8x52xf32>
    %c8 = arith.constant 8 : index
    %68 = memref.load %arg2[%c8] : memref<36xf32, #tpu.memory_space<smem>>
    %69 = vector.broadcast %68 : f32 to vector<8x52xf32>
    %70 = arith.mulf %69, %19 : vector<8x52xf32>
    %71 = arith.addf %67, %70 : vector<8x52xf32>
    %c9 = arith.constant 9 : index
    %72 = memref.load %arg2[%c9] : memref<36xf32, #tpu.memory_space<smem>>
    %73 = vector.broadcast %72 : f32 to vector<8x52xf32>
    %74 = arith.mulf %73, %21 : vector<8x52xf32>
    %75 = arith.addf %71, %74 : vector<8x52xf32>
    %c10 = arith.constant 10 : index
    %76 = memref.load %arg2[%c10] : memref<36xf32, #tpu.memory_space<smem>>
    %77 = vector.broadcast %76 : f32 to vector<8x52xf32>
    %78 = arith.mulf %77, %23 : vector<8x52xf32>
    %79 = arith.addf %75, %78 : vector<8x52xf32>
    %c11 = arith.constant 11 : index
    %80 = memref.load %arg2[%c11] : memref<36xf32, #tpu.memory_space<smem>>
    %81 = vector.broadcast %80 : f32 to vector<8x52xf32>
    %82 = arith.mulf %81, %25 : vector<8x52xf32>
    %83 = arith.addf %79, %82 : vector<8x52xf32>
    %cst_5 = arith.constant 0.000000e+00 : f32
    %84 = vector.broadcast %cst_5 : f32 to vector<8x52xf32>
    %85 = arith.cmpf ogt, %83, %84 : vector<8x52xf32>
    %cst_6 = arith.constant 0.00999999977 : f32
    %86 = vector.broadcast %cst_6 : f32 to vector<8x52xf32>
    %87 = arith.mulf %86, %83 : vector<8x52xf32>
    %88 = arith.select %85, %83, %87 : vector<8x52xi1>, vector<8x52xf32>
    %cst_7 = arith.constant 0.000000e+00 : f32
    %89 = vector.broadcast %cst_7 : f32 to vector<8x52xf32>
    %90 = arith.select %31, %88, %89 : vector<8x52xi1>, vector<8x52xf32>
    %cst_8 = arith.constant 0.000000e+00 : f32
    %91 = vector.broadcast %cst_8 : f32 to vector<8x52xf32>
    %c1_9 = arith.constant 1 : index
    %92 = memref.load %arg3[%c1_9] : memref<3xf32, #tpu.memory_space<smem>>
    %93 = vector.broadcast %92 : f32 to vector<8x52xf32>
    %94 = arith.addf %91, %93 : vector<8x52xf32>
    %c12 = arith.constant 12 : index
    %95 = memref.load %arg2[%c12] : memref<36xf32, #tpu.memory_space<smem>>
    %96 = vector.broadcast %95 : f32 to vector<8x52xf32>
    %97 = arith.mulf %96, %3 : vector<8x52xf32>
    %98 = arith.addf %94, %97 : vector<8x52xf32>
    %c13 = arith.constant 13 : index
    %99 = memref.load %arg2[%c13] : memref<36xf32, #tpu.memory_space<smem>>
    %100 = vector.broadcast %99 : f32 to vector<8x52xf32>
    %101 = arith.mulf %100, %5 : vector<8x52xf32>
    %102 = arith.addf %98, %101 : vector<8x52xf32>
    %c14 = arith.constant 14 : index
    %103 = memref.load %arg2[%c14] : memref<36xf32, #tpu.memory_space<smem>>
    %104 = vector.broadcast %103 : f32 to vector<8x52xf32>
    %105 = arith.mulf %104, %7 : vector<8x52xf32>
    %106 = arith.addf %102, %105 : vector<8x52xf32>
    %c15 = arith.constant 15 : index
    %107 = memref.load %arg2[%c15] : memref<36xf32, #tpu.memory_space<smem>>
    %108 = vector.broadcast %107 : f32 to vector<8x52xf32>
    %109 = arith.mulf %108, %9 : vector<8x52xf32>
    %110 = arith.addf %106, %109 : vector<8x52xf32>
    %c16 = arith.constant 16 : index
    %111 = memref.load %arg2[%c16] : memref<36xf32, #tpu.memory_space<smem>>
    %112 = vector.broadcast %111 : f32 to vector<8x52xf32>
    %113 = arith.mulf %112, %11 : vector<8x52xf32>
    %114 = arith.addf %110, %113 : vector<8x52xf32>
    %c17 = arith.constant 17 : index
    %115 = memref.load %arg2[%c17] : memref<36xf32, #tpu.memory_space<smem>>
    %116 = vector.broadcast %115 : f32 to vector<8x52xf32>
    %117 = arith.mulf %116, %13 : vector<8x52xf32>
    %118 = arith.addf %114, %117 : vector<8x52xf32>
    %c18 = arith.constant 18 : index
    %119 = memref.load %arg2[%c18] : memref<36xf32, #tpu.memory_space<smem>>
    %120 = vector.broadcast %119 : f32 to vector<8x52xf32>
    %121 = arith.mulf %120, %15 : vector<8x52xf32>
    %122 = arith.addf %118, %121 : vector<8x52xf32>
    %c19 = arith.constant 19 : index
    %123 = memref.load %arg2[%c19] : memref<36xf32, #tpu.memory_space<smem>>
    %124 = vector.broadcast %123 : f32 to vector<8x52xf32>
    %125 = arith.mulf %124, %17 : vector<8x52xf32>
    %126 = arith.addf %122, %125 : vector<8x52xf32>
    %c20 = arith.constant 20 : index
    %127 = memref.load %arg2[%c20] : memref<36xf32, #tpu.memory_space<smem>>
    %128 = vector.broadcast %127 : f32 to vector<8x52xf32>
    %129 = arith.mulf %128, %19 : vector<8x52xf32>
    %130 = arith.addf %126, %129 : vector<8x52xf32>
    %c21 = arith.constant 21 : index
    %131 = memref.load %arg2[%c21] : memref<36xf32, #tpu.memory_space<smem>>
    %132 = vector.broadcast %131 : f32 to vector<8x52xf32>
    %133 = arith.mulf %132, %21 : vector<8x52xf32>
    %134 = arith.addf %130, %133 : vector<8x52xf32>
    %c22 = arith.constant 22 : index
    %135 = memref.load %arg2[%c22] : memref<36xf32, #tpu.memory_space<smem>>
    %136 = vector.broadcast %135 : f32 to vector<8x52xf32>
    %137 = arith.mulf %136, %23 : vector<8x52xf32>
    %138 = arith.addf %134, %137 : vector<8x52xf32>
    %c23 = arith.constant 23 : index
    %139 = memref.load %arg2[%c23] : memref<36xf32, #tpu.memory_space<smem>>
    %140 = vector.broadcast %139 : f32 to vector<8x52xf32>
    %141 = arith.mulf %140, %25 : vector<8x52xf32>
    %142 = arith.addf %138, %141 : vector<8x52xf32>
    %cst_10 = arith.constant 0.000000e+00 : f32
    %143 = vector.broadcast %cst_10 : f32 to vector<8x52xf32>
    %144 = arith.cmpf ogt, %142, %143 : vector<8x52xf32>
    %cst_11 = arith.constant 0.00999999977 : f32
    %145 = vector.broadcast %cst_11 : f32 to vector<8x52xf32>
    %146 = arith.mulf %145, %142 : vector<8x52xf32>
    %147 = arith.select %144, %142, %146 : vector<8x52xi1>, vector<8x52xf32>
    %cst_12 = arith.constant 0.000000e+00 : f32
    %148 = vector.broadcast %cst_12 : f32 to vector<8x52xf32>
    %149 = arith.select %31, %147, %148 : vector<8x52xi1>, vector<8x52xf32>
    %cst_13 = arith.constant 0.000000e+00 : f32
    %150 = vector.broadcast %cst_13 : f32 to vector<8x52xf32>
    %c2_14 = arith.constant 2 : index
    %151 = memref.load %arg3[%c2_14] : memref<3xf32, #tpu.memory_space<smem>>
    %152 = vector.broadcast %151 : f32 to vector<8x52xf32>
    %153 = arith.addf %150, %152 : vector<8x52xf32>
    %c24 = arith.constant 24 : index
    %154 = memref.load %arg2[%c24] : memref<36xf32, #tpu.memory_space<smem>>
    %155 = vector.broadcast %154 : f32 to vector<8x52xf32>
    %156 = arith.mulf %155, %3 : vector<8x52xf32>
    %157 = arith.addf %153, %156 : vector<8x52xf32>
    %c25 = arith.constant 25 : index
    %158 = memref.load %arg2[%c25] : memref<36xf32, #tpu.memory_space<smem>>
    %159 = vector.broadcast %158 : f32 to vector<8x52xf32>
    %160 = arith.mulf %159, %5 : vector<8x52xf32>
    %161 = arith.addf %157, %160 : vector<8x52xf32>
    %c26 = arith.constant 26 : index
    %162 = memref.load %arg2[%c26] : memref<36xf32, #tpu.memory_space<smem>>
    %163 = vector.broadcast %162 : f32 to vector<8x52xf32>
    %164 = arith.mulf %163, %7 : vector<8x52xf32>
    %165 = arith.addf %161, %164 : vector<8x52xf32>
    %c27 = arith.constant 27 : index
    %166 = memref.load %arg2[%c27] : memref<36xf32, #tpu.memory_space<smem>>
    %167 = vector.broadcast %166 : f32 to vector<8x52xf32>
    %168 = arith.mulf %167, %9 : vector<8x52xf32>
    %169 = arith.addf %165, %168 : vector<8x52xf32>
    %c28 = arith.constant 28 : index
    %170 = memref.load %arg2[%c28] : memref<36xf32, #tpu.memory_space<smem>>
    %171 = vector.broadcast %170 : f32 to vector<8x52xf32>
    %172 = arith.mulf %171, %11 : vector<8x52xf32>
    %173 = arith.addf %169, %172 : vector<8x52xf32>
    %c29 = arith.constant 29 : index
    %174 = memref.load %arg2[%c29] : memref<36xf32, #tpu.memory_space<smem>>
    %175 = vector.broadcast %174 : f32 to vector<8x52xf32>
    %176 = arith.mulf %175, %13 : vector<8x52xf32>
    %177 = arith.addf %173, %176 : vector<8x52xf32>
    %c30 = arith.constant 30 : index
    %178 = memref.load %arg2[%c30] : memref<36xf32, #tpu.memory_space<smem>>
    %179 = vector.broadcast %178 : f32 to vector<8x52xf32>
    %180 = arith.mulf %179, %15 : vector<8x52xf32>
    %181 = arith.addf %177, %180 : vector<8x52xf32>
    %c31 = arith.constant 31 : index
    %182 = memref.load %arg2[%c31] : memref<36xf32, #tpu.memory_space<smem>>
    %183 = vector.broadcast %182 : f32 to vector<8x52xf32>
    %184 = arith.mulf %183, %17 : vector<8x52xf32>
    %185 = arith.addf %181, %184 : vector<8x52xf32>
    %c32 = arith.constant 32 : index
    %186 = memref.load %arg2[%c32] : memref<36xf32, #tpu.memory_space<smem>>
    %187 = vector.broadcast %186 : f32 to vector<8x52xf32>
    %188 = arith.mulf %187, %19 : vector<8x52xf32>
    %189 = arith.addf %185, %188 : vector<8x52xf32>
    %c33 = arith.constant 33 : index
    %190 = memref.load %arg2[%c33] : memref<36xf32, #tpu.memory_space<smem>>
    %191 = vector.broadcast %190 : f32 to vector<8x52xf32>
    %192 = arith.mulf %191, %21 : vector<8x52xf32>
    %193 = arith.addf %189, %192 : vector<8x52xf32>
    %c34 = arith.constant 34 : index
    %194 = memref.load %arg2[%c34] : memref<36xf32, #tpu.memory_space<smem>>
    %195 = vector.broadcast %194 : f32 to vector<8x52xf32>
    %196 = arith.mulf %195, %23 : vector<8x52xf32>
    %197 = arith.addf %193, %196 : vector<8x52xf32>
    %c35 = arith.constant 35 : index
    %198 = memref.load %arg2[%c35] : memref<36xf32, #tpu.memory_space<smem>>
    %199 = vector.broadcast %198 : f32 to vector<8x52xf32>
    %200 = arith.mulf %199, %25 : vector<8x52xf32>
    %201 = arith.addf %197, %200 : vector<8x52xf32>
    %cst_15 = arith.constant 0.000000e+00 : f32
    %202 = vector.broadcast %cst_15 : f32 to vector<8x52xf32>
    %203 = arith.cmpf ogt, %201, %202 : vector<8x52xf32>
    %cst_16 = arith.constant 0.00999999977 : f32
    %204 = vector.broadcast %cst_16 : f32 to vector<8x52xf32>
    %205 = arith.mulf %204, %201 : vector<8x52xf32>
    %206 = arith.select %203, %201, %205 : vector<8x52xi1>, vector<8x52xf32>
    %cst_17 = arith.constant 0.000000e+00 : f32
    %207 = vector.broadcast %cst_17 : f32 to vector<8x52xf32>
    %208 = arith.select %31, %206, %207 : vector<8x52xi1>, vector<8x52xf32>
    %209 = vector.extract_strided_slice %90 {offsets = [0, 0], sizes = [8, 50], strides = [1, 1]} : vector<8x52xf32> to vector<8x50xf32>
    %210 = vector.extract_strided_slice %90 {offsets = [0, 1], sizes = [8, 50], strides = [1, 1]} : vector<8x52xf32> to vector<8x50xf32>
    %211 = vector.extract_strided_slice %90 {offsets = [0, 2], sizes = [8, 50], strides = [1, 1]} : vector<8x52xf32> to vector<8x50xf32>
    %212 = vector.extract_strided_slice %149 {offsets = [0, 0], sizes = [8, 50], strides = [1, 1]} : vector<8x52xf32> to vector<8x50xf32>
    %213 = vector.extract_strided_slice %149 {offsets = [0, 1], sizes = [8, 50], strides = [1, 1]} : vector<8x52xf32> to vector<8x50xf32>
    %214 = vector.extract_strided_slice %149 {offsets = [0, 2], sizes = [8, 50], strides = [1, 1]} : vector<8x52xf32> to vector<8x50xf32>
    %215 = vector.extract_strided_slice %208 {offsets = [0, 0], sizes = [8, 50], strides = [1, 1]} : vector<8x52xf32> to vector<8x50xf32>
    %216 = vector.extract_strided_slice %208 {offsets = [0, 1], sizes = [8, 50], strides = [1, 1]} : vector<8x52xf32> to vector<8x50xf32>
    %217 = vector.extract_strided_slice %208 {offsets = [0, 2], sizes = [8, 50], strides = [1, 1]} : vector<8x52xf32> to vector<8x50xf32>
    %cst_18 = arith.constant 0.000000e+00 : f32
    %218 = vector.broadcast %cst_18 : f32 to vector<8x50xf32>
    %c0_19 = arith.constant 0 : index
    %219 = memref.load %arg5[%c0_19] : memref<6xf32, #tpu.memory_space<smem>>
    %220 = vector.broadcast %219 : f32 to vector<8x50xf32>
    %221 = arith.addf %218, %220 : vector<8x50xf32>
    %c0_20 = arith.constant 0 : index
    %222 = memref.load %arg4[%c0_20] : memref<54xf32, #tpu.memory_space<smem>>
    %223 = vector.broadcast %222 : f32 to vector<8x50xf32>
    %224 = arith.mulf %223, %209 : vector<8x50xf32>
    %225 = arith.addf %221, %224 : vector<8x50xf32>
    %c1_21 = arith.constant 1 : index
    %226 = memref.load %arg4[%c1_21] : memref<54xf32, #tpu.memory_space<smem>>
    %227 = vector.broadcast %226 : f32 to vector<8x50xf32>
    %228 = arith.mulf %227, %210 : vector<8x50xf32>
    %229 = arith.addf %225, %228 : vector<8x50xf32>
    %c2_22 = arith.constant 2 : index
    %230 = memref.load %arg4[%c2_22] : memref<54xf32, #tpu.memory_space<smem>>
    %231 = vector.broadcast %230 : f32 to vector<8x50xf32>
    %232 = arith.mulf %231, %211 : vector<8x50xf32>
    %233 = arith.addf %229, %232 : vector<8x50xf32>
    %c3_23 = arith.constant 3 : index
    %234 = memref.load %arg4[%c3_23] : memref<54xf32, #tpu.memory_space<smem>>
    %235 = vector.broadcast %234 : f32 to vector<8x50xf32>
    %236 = arith.mulf %235, %212 : vector<8x50xf32>
    %237 = arith.addf %233, %236 : vector<8x50xf32>
    %c4_24 = arith.constant 4 : index
    %238 = memref.load %arg4[%c4_24] : memref<54xf32, #tpu.memory_space<smem>>
    %239 = vector.broadcast %238 : f32 to vector<8x50xf32>
    %240 = arith.mulf %239, %213 : vector<8x50xf32>
    %241 = arith.addf %237, %240 : vector<8x50xf32>
    %c5_25 = arith.constant 5 : index
    %242 = memref.load %arg4[%c5_25] : memref<54xf32, #tpu.memory_space<smem>>
    %243 = vector.broadcast %242 : f32 to vector<8x50xf32>
    %244 = arith.mulf %243, %214 : vector<8x50xf32>
    %245 = arith.addf %241, %244 : vector<8x50xf32>
    %c6_26 = arith.constant 6 : index
    %246 = memref.load %arg4[%c6_26] : memref<54xf32, #tpu.memory_space<smem>>
    %247 = vector.broadcast %246 : f32 to vector<8x50xf32>
    %248 = arith.mulf %247, %215 : vector<8x50xf32>
    %249 = arith.addf %245, %248 : vector<8x50xf32>
    %c7_27 = arith.constant 7 : index
    %250 = memref.load %arg4[%c7_27] : memref<54xf32, #tpu.memory_space<smem>>
    %251 = vector.broadcast %250 : f32 to vector<8x50xf32>
    %252 = arith.mulf %251, %216 : vector<8x50xf32>
    %253 = arith.addf %249, %252 : vector<8x50xf32>
    %c8_28 = arith.constant 8 : index
    %254 = memref.load %arg4[%c8_28] : memref<54xf32, #tpu.memory_space<smem>>
    %255 = vector.broadcast %254 : f32 to vector<8x50xf32>
    %256 = arith.mulf %255, %217 : vector<8x50xf32>
    %257 = arith.addf %253, %256 : vector<8x50xf32>
    %cst_29 = arith.constant 0.000000e+00 : f32
    %258 = vector.broadcast %cst_29 : f32 to vector<8x50xf32>
    %259 = arith.cmpf ogt, %257, %258 : vector<8x50xf32>
    %cst_30 = arith.constant 0.00999999977 : f32
    %260 = vector.broadcast %cst_30 : f32 to vector<8x50xf32>
    %261 = arith.mulf %260, %257 : vector<8x50xf32>
    %262 = arith.select %259, %257, %261 : vector<8x50xi1>, vector<8x50xf32>
    %cst_31 = arith.constant 0.000000e+00 : f32
    %263 = vector.broadcast %cst_31 : f32 to vector<8x50xf32>
    %c1_32 = arith.constant 1 : index
    %264 = memref.load %arg5[%c1_32] : memref<6xf32, #tpu.memory_space<smem>>
    %265 = vector.broadcast %264 : f32 to vector<8x50xf32>
    %266 = arith.addf %263, %265 : vector<8x50xf32>
    %c9_33 = arith.constant 9 : index
    %267 = memref.load %arg4[%c9_33] : memref<54xf32, #tpu.memory_space<smem>>
    %268 = vector.broadcast %267 : f32 to vector<8x50xf32>
    %269 = arith.mulf %268, %209 : vector<8x50xf32>
    %270 = arith.addf %266, %269 : vector<8x50xf32>
    %c10_34 = arith.constant 10 : index
    %271 = memref.load %arg4[%c10_34] : memref<54xf32, #tpu.memory_space<smem>>
    %272 = vector.broadcast %271 : f32 to vector<8x50xf32>
    %273 = arith.mulf %272, %210 : vector<8x50xf32>
    %274 = arith.addf %270, %273 : vector<8x50xf32>
    %c11_35 = arith.constant 11 : index
    %275 = memref.load %arg4[%c11_35] : memref<54xf32, #tpu.memory_space<smem>>
    %276 = vector.broadcast %275 : f32 to vector<8x50xf32>
    %277 = arith.mulf %276, %211 : vector<8x50xf32>
    %278 = arith.addf %274, %277 : vector<8x50xf32>
    %c12_36 = arith.constant 12 : index
    %279 = memref.load %arg4[%c12_36] : memref<54xf32, #tpu.memory_space<smem>>
    %280 = vector.broadcast %279 : f32 to vector<8x50xf32>
    %281 = arith.mulf %280, %212 : vector<8x50xf32>
    %282 = arith.addf %278, %281 : vector<8x50xf32>
    %c13_37 = arith.constant 13 : index
    %283 = memref.load %arg4[%c13_37] : memref<54xf32, #tpu.memory_space<smem>>
    %284 = vector.broadcast %283 : f32 to vector<8x50xf32>
    %285 = arith.mulf %284, %213 : vector<8x50xf32>
    %286 = arith.addf %282, %285 : vector<8x50xf32>
    %c14_38 = arith.constant 14 : index
    %287 = memref.load %arg4[%c14_38] : memref<54xf32, #tpu.memory_space<smem>>
    %288 = vector.broadcast %287 : f32 to vector<8x50xf32>
    %289 = arith.mulf %288, %214 : vector<8x50xf32>
    %290 = arith.addf %286, %289 : vector<8x50xf32>
    %c15_39 = arith.constant 15 : index
    %291 = memref.load %arg4[%c15_39] : memref<54xf32, #tpu.memory_space<smem>>
    %292 = vector.broadcast %291 : f32 to vector<8x50xf32>
    %293 = arith.mulf %292, %215 : vector<8x50xf32>
    %294 = arith.addf %290, %293 : vector<8x50xf32>
    %c16_40 = arith.constant 16 : index
    %295 = memref.load %arg4[%c16_40] : memref<54xf32, #tpu.memory_space<smem>>
    %296 = vector.broadcast %295 : f32 to vector<8x50xf32>
    %297 = arith.mulf %296, %216 : vector<8x50xf32>
    %298 = arith.addf %294, %297 : vector<8x50xf32>
    %c17_41 = arith.constant 17 : index
    %299 = memref.load %arg4[%c17_41] : memref<54xf32, #tpu.memory_space<smem>>
    %300 = vector.broadcast %299 : f32 to vector<8x50xf32>
    %301 = arith.mulf %300, %217 : vector<8x50xf32>
    %302 = arith.addf %298, %301 : vector<8x50xf32>
    %cst_42 = arith.constant 0.000000e+00 : f32
    %303 = vector.broadcast %cst_42 : f32 to vector<8x50xf32>
    %304 = arith.cmpf ogt, %302, %303 : vector<8x50xf32>
    %cst_43 = arith.constant 0.00999999977 : f32
    %305 = vector.broadcast %cst_43 : f32 to vector<8x50xf32>
    %306 = arith.mulf %305, %302 : vector<8x50xf32>
    %307 = arith.select %304, %302, %306 : vector<8x50xi1>, vector<8x50xf32>
    %cst_44 = arith.constant 0.000000e+00 : f32
    %308 = vector.broadcast %cst_44 : f32 to vector<8x50xf32>
    %c2_45 = arith.constant 2 : index
    %309 = memref.load %arg5[%c2_45] : memref<6xf32, #tpu.memory_space<smem>>
    %310 = vector.broadcast %309 : f32 to vector<8x50xf32>
    %311 = arith.addf %308, %310 : vector<8x50xf32>
    %c18_46 = arith.constant 18 : index
    %312 = memref.load %arg4[%c18_46] : memref<54xf32, #tpu.memory_space<smem>>
    %313 = vector.broadcast %312 : f32 to vector<8x50xf32>
    %314 = arith.mulf %313, %209 : vector<8x50xf32>
    %315 = arith.addf %311, %314 : vector<8x50xf32>
    %c19_47 = arith.constant 19 : index
    %316 = memref.load %arg4[%c19_47] : memref<54xf32, #tpu.memory_space<smem>>
    %317 = vector.broadcast %316 : f32 to vector<8x50xf32>
    %318 = arith.mulf %317, %210 : vector<8x50xf32>
    %319 = arith.addf %315, %318 : vector<8x50xf32>
    %c20_48 = arith.constant 20 : index
    %320 = memref.load %arg4[%c20_48] : memref<54xf32, #tpu.memory_space<smem>>
    %321 = vector.broadcast %320 : f32 to vector<8x50xf32>
    %322 = arith.mulf %321, %211 : vector<8x50xf32>
    %323 = arith.addf %319, %322 : vector<8x50xf32>
    %c21_49 = arith.constant 21 : index
    %324 = memref.load %arg4[%c21_49] : memref<54xf32, #tpu.memory_space<smem>>
    %325 = vector.broadcast %324 : f32 to vector<8x50xf32>
    %326 = arith.mulf %325, %212 : vector<8x50xf32>
    %327 = arith.addf %323, %326 : vector<8x50xf32>
    %c22_50 = arith.constant 22 : index
    %328 = memref.load %arg4[%c22_50] : memref<54xf32, #tpu.memory_space<smem>>
    %329 = vector.broadcast %328 : f32 to vector<8x50xf32>
    %330 = arith.mulf %329, %213 : vector<8x50xf32>
    %331 = arith.addf %327, %330 : vector<8x50xf32>
    %c23_51 = arith.constant 23 : index
    %332 = memref.load %arg4[%c23_51] : memref<54xf32, #tpu.memory_space<smem>>
    %333 = vector.broadcast %332 : f32 to vector<8x50xf32>
    %334 = arith.mulf %333, %214 : vector<8x50xf32>
    %335 = arith.addf %331, %334 : vector<8x50xf32>
    %c24_52 = arith.constant 24 : index
    %336 = memref.load %arg4[%c24_52] : memref<54xf32, #tpu.memory_space<smem>>
    %337 = vector.broadcast %336 : f32 to vector<8x50xf32>
    %338 = arith.mulf %337, %215 : vector<8x50xf32>
    %339 = arith.addf %335, %338 : vector<8x50xf32>
    %c25_53 = arith.constant 25 : index
    %340 = memref.load %arg4[%c25_53] : memref<54xf32, #tpu.memory_space<smem>>
    %341 = vector.broadcast %340 : f32 to vector<8x50xf32>
    %342 = arith.mulf %341, %216 : vector<8x50xf32>
    %343 = arith.addf %339, %342 : vector<8x50xf32>
    %c26_54 = arith.constant 26 : index
    %344 = memref.load %arg4[%c26_54] : memref<54xf32, #tpu.memory_space<smem>>
    %345 = vector.broadcast %344 : f32 to vector<8x50xf32>
    %346 = arith.mulf %345, %217 : vector<8x50xf32>
    %347 = arith.addf %343, %346 : vector<8x50xf32>
    %cst_55 = arith.constant 0.000000e+00 : f32
    %348 = vector.broadcast %cst_55 : f32 to vector<8x50xf32>
    %349 = arith.cmpf ogt, %347, %348 : vector<8x50xf32>
    %cst_56 = arith.constant 0.00999999977 : f32
    %350 = vector.broadcast %cst_56 : f32 to vector<8x50xf32>
    %351 = arith.mulf %350, %347 : vector<8x50xf32>
    %352 = arith.select %349, %347, %351 : vector<8x50xi1>, vector<8x50xf32>
    %cst_57 = arith.constant 0.000000e+00 : f32
    %353 = vector.broadcast %cst_57 : f32 to vector<8x50xf32>
    %c3_58 = arith.constant 3 : index
    %354 = memref.load %arg5[%c3_58] : memref<6xf32, #tpu.memory_space<smem>>
    %355 = vector.broadcast %354 : f32 to vector<8x50xf32>
    %356 = arith.addf %353, %355 : vector<8x50xf32>
    %c27_59 = arith.constant 27 : index
    %357 = memref.load %arg4[%c27_59] : memref<54xf32, #tpu.memory_space<smem>>
    %358 = vector.broadcast %357 : f32 to vector<8x50xf32>
    %359 = arith.mulf %358, %209 : vector<8x50xf32>
    %360 = arith.addf %356, %359 : vector<8x50xf32>
    %c28_60 = arith.constant 28 : index
    %361 = memref.load %arg4[%c28_60] : memref<54xf32, #tpu.memory_space<smem>>
    %362 = vector.broadcast %361 : f32 to vector<8x50xf32>
    %363 = arith.mulf %362, %210 : vector<8x50xf32>
    %364 = arith.addf %360, %363 : vector<8x50xf32>
    %c29_61 = arith.constant 29 : index
    %365 = memref.load %arg4[%c29_61] : memref<54xf32, #tpu.memory_space<smem>>
    %366 = vector.broadcast %365 : f32 to vector<8x50xf32>
    %367 = arith.mulf %366, %211 : vector<8x50xf32>
    %368 = arith.addf %364, %367 : vector<8x50xf32>
    %c30_62 = arith.constant 30 : index
    %369 = memref.load %arg4[%c30_62] : memref<54xf32, #tpu.memory_space<smem>>
    %370 = vector.broadcast %369 : f32 to vector<8x50xf32>
    %371 = arith.mulf %370, %212 : vector<8x50xf32>
    %372 = arith.addf %368, %371 : vector<8x50xf32>
    %c31_63 = arith.constant 31 : index
    %373 = memref.load %arg4[%c31_63] : memref<54xf32, #tpu.memory_space<smem>>
    %374 = vector.broadcast %373 : f32 to vector<8x50xf32>
    %375 = arith.mulf %374, %213 : vector<8x50xf32>
    %376 = arith.addf %372, %375 : vector<8x50xf32>
    %c32_64 = arith.constant 32 : index
    %377 = memref.load %arg4[%c32_64] : memref<54xf32, #tpu.memory_space<smem>>
    %378 = vector.broadcast %377 : f32 to vector<8x50xf32>
    %379 = arith.mulf %378, %214 : vector<8x50xf32>
    %380 = arith.addf %376, %379 : vector<8x50xf32>
    %c33_65 = arith.constant 33 : index
    %381 = memref.load %arg4[%c33_65] : memref<54xf32, #tpu.memory_space<smem>>
    %382 = vector.broadcast %381 : f32 to vector<8x50xf32>
    %383 = arith.mulf %382, %215 : vector<8x50xf32>
    %384 = arith.addf %380, %383 : vector<8x50xf32>
    %c34_66 = arith.constant 34 : index
    %385 = memref.load %arg4[%c34_66] : memref<54xf32, #tpu.memory_space<smem>>
    %386 = vector.broadcast %385 : f32 to vector<8x50xf32>
    %387 = arith.mulf %386, %216 : vector<8x50xf32>
    %388 = arith.addf %384, %387 : vector<8x50xf32>
    %c35_67 = arith.constant 35 : index
    %389 = memref.load %arg4[%c35_67] : memref<54xf32, #tpu.memory_space<smem>>
    %390 = vector.broadcast %389 : f32 to vector<8x50xf32>
    %391 = arith.mulf %390, %217 : vector<8x50xf32>
    %392 = arith.addf %388, %391 : vector<8x50xf32>
    %cst_68 = arith.constant 0.000000e+00 : f32
    %393 = vector.broadcast %cst_68 : f32 to vector<8x50xf32>
    %394 = arith.cmpf ogt, %392, %393 : vector<8x50xf32>
    %cst_69 = arith.constant 0.00999999977 : f32
    %395 = vector.broadcast %cst_69 : f32 to vector<8x50xf32>
    %396 = arith.mulf %395, %392 : vector<8x50xf32>
    %397 = arith.select %394, %392, %396 : vector<8x50xi1>, vector<8x50xf32>
    %cst_70 = arith.constant 0.000000e+00 : f32
    %398 = vector.broadcast %cst_70 : f32 to vector<8x50xf32>
    %c4_71 = arith.constant 4 : index
    %399 = memref.load %arg5[%c4_71] : memref<6xf32, #tpu.memory_space<smem>>
    %400 = vector.broadcast %399 : f32 to vector<8x50xf32>
    %401 = arith.addf %398, %400 : vector<8x50xf32>
    %c36 = arith.constant 36 : index
    %402 = memref.load %arg4[%c36] : memref<54xf32, #tpu.memory_space<smem>>
    %403 = vector.broadcast %402 : f32 to vector<8x50xf32>
    %404 = arith.mulf %403, %209 : vector<8x50xf32>
    %405 = arith.addf %401, %404 : vector<8x50xf32>
    %c37 = arith.constant 37 : index
    %406 = memref.load %arg4[%c37] : memref<54xf32, #tpu.memory_space<smem>>
    %407 = vector.broadcast %406 : f32 to vector<8x50xf32>
    %408 = arith.mulf %407, %210 : vector<8x50xf32>
    %409 = arith.addf %405, %408 : vector<8x50xf32>
    %c38 = arith.constant 38 : index
    %410 = memref.load %arg4[%c38] : memref<54xf32, #tpu.memory_space<smem>>
    %411 = vector.broadcast %410 : f32 to vector<8x50xf32>
    %412 = arith.mulf %411, %211 : vector<8x50xf32>
    %413 = arith.addf %409, %412 : vector<8x50xf32>
    %c39 = arith.constant 39 : index
    %414 = memref.load %arg4[%c39] : memref<54xf32, #tpu.memory_space<smem>>
    %415 = vector.broadcast %414 : f32 to vector<8x50xf32>
    %416 = arith.mulf %415, %212 : vector<8x50xf32>
    %417 = arith.addf %413, %416 : vector<8x50xf32>
    %c40 = arith.constant 40 : index
    %418 = memref.load %arg4[%c40] : memref<54xf32, #tpu.memory_space<smem>>
    %419 = vector.broadcast %418 : f32 to vector<8x50xf32>
    %420 = arith.mulf %419, %213 : vector<8x50xf32>
    %421 = arith.addf %417, %420 : vector<8x50xf32>
    %c41 = arith.constant 41 : index
    %422 = memref.load %arg4[%c41] : memref<54xf32, #tpu.memory_space<smem>>
    %423 = vector.broadcast %422 : f32 to vector<8x50xf32>
    %424 = arith.mulf %423, %214 : vector<8x50xf32>
    %425 = arith.addf %421, %424 : vector<8x50xf32>
    %c42 = arith.constant 42 : index
    %426 = memref.load %arg4[%c42] : memref<54xf32, #tpu.memory_space<smem>>
    %427 = vector.broadcast %426 : f32 to vector<8x50xf32>
    %428 = arith.mulf %427, %215 : vector<8x50xf32>
    %429 = arith.addf %425, %428 : vector<8x50xf32>
    %c43 = arith.constant 43 : index
    %430 = memref.load %arg4[%c43] : memref<54xf32, #tpu.memory_space<smem>>
    %431 = vector.broadcast %430 : f32 to vector<8x50xf32>
    %432 = arith.mulf %431, %216 : vector<8x50xf32>
    %433 = arith.addf %429, %432 : vector<8x50xf32>
    %c44 = arith.constant 44 : index
    %434 = memref.load %arg4[%c44] : memref<54xf32, #tpu.memory_space<smem>>
    %435 = vector.broadcast %434 : f32 to vector<8x50xf32>
    %436 = arith.mulf %435, %217 : vector<8x50xf32>
    %437 = arith.addf %433, %436 : vector<8x50xf32>
    %cst_72 = arith.constant 0.000000e+00 : f32
    %438 = vector.broadcast %cst_72 : f32 to vector<8x50xf32>
    %439 = arith.cmpf ogt, %437, %438 : vector<8x50xf32>
    %cst_73 = arith.constant 0.00999999977 : f32
    %440 = vector.broadcast %cst_73 : f32 to vector<8x50xf32>
    %441 = arith.mulf %440, %437 : vector<8x50xf32>
    %442 = arith.select %439, %437, %441 : vector<8x50xi1>, vector<8x50xf32>
    %cst_74 = arith.constant 0.000000e+00 : f32
    %443 = vector.broadcast %cst_74 : f32 to vector<8x50xf32>
    %c5_75 = arith.constant 5 : index
    %444 = memref.load %arg5[%c5_75] : memref<6xf32, #tpu.memory_space<smem>>
    %445 = vector.broadcast %444 : f32 to vector<8x50xf32>
    %446 = arith.addf %443, %445 : vector<8x50xf32>
    %c45 = arith.constant 45 : index
    %447 = memref.load %arg4[%c45] : memref<54xf32, #tpu.memory_space<smem>>
    %448 = vector.broadcast %447 : f32 to vector<8x50xf32>
    %449 = arith.mulf %448, %209 : vector<8x50xf32>
    %450 = arith.addf %446, %449 : vector<8x50xf32>
    %c46 = arith.constant 46 : index
    %451 = memref.load %arg4[%c46] : memref<54xf32, #tpu.memory_space<smem>>
    %452 = vector.broadcast %451 : f32 to vector<8x50xf32>
    %453 = arith.mulf %452, %210 : vector<8x50xf32>
    %454 = arith.addf %450, %453 : vector<8x50xf32>
    %c47 = arith.constant 47 : index
    %455 = memref.load %arg4[%c47] : memref<54xf32, #tpu.memory_space<smem>>
    %456 = vector.broadcast %455 : f32 to vector<8x50xf32>
    %457 = arith.mulf %456, %211 : vector<8x50xf32>
    %458 = arith.addf %454, %457 : vector<8x50xf32>
    %c48 = arith.constant 48 : index
    %459 = memref.load %arg4[%c48] : memref<54xf32, #tpu.memory_space<smem>>
    %460 = vector.broadcast %459 : f32 to vector<8x50xf32>
    %461 = arith.mulf %460, %212 : vector<8x50xf32>
    %462 = arith.addf %458, %461 : vector<8x50xf32>
    %c49 = arith.constant 49 : index
    %463 = memref.load %arg4[%c49] : memref<54xf32, #tpu.memory_space<smem>>
    %464 = vector.broadcast %463 : f32 to vector<8x50xf32>
    %465 = arith.mulf %464, %213 : vector<8x50xf32>
    %466 = arith.addf %462, %465 : vector<8x50xf32>
    %c50 = arith.constant 50 : index
    %467 = memref.load %arg4[%c50] : memref<54xf32, #tpu.memory_space<smem>>
    %468 = vector.broadcast %467 : f32 to vector<8x50xf32>
    %469 = arith.mulf %468, %214 : vector<8x50xf32>
    %470 = arith.addf %466, %469 : vector<8x50xf32>
    %c51 = arith.constant 51 : index
    %471 = memref.load %arg4[%c51] : memref<54xf32, #tpu.memory_space<smem>>
    %472 = vector.broadcast %471 : f32 to vector<8x50xf32>
    %473 = arith.mulf %472, %215 : vector<8x50xf32>
    %474 = arith.addf %470, %473 : vector<8x50xf32>
    %c52 = arith.constant 52 : index
    %475 = memref.load %arg4[%c52] : memref<54xf32, #tpu.memory_space<smem>>
    %476 = vector.broadcast %475 : f32 to vector<8x50xf32>
    %477 = arith.mulf %476, %216 : vector<8x50xf32>
    %478 = arith.addf %474, %477 : vector<8x50xf32>
    %c53 = arith.constant 53 : index
    %479 = memref.load %arg4[%c53] : memref<54xf32, #tpu.memory_space<smem>>
    %480 = vector.broadcast %479 : f32 to vector<8x50xf32>
    %481 = arith.mulf %480, %217 : vector<8x50xf32>
    %482 = arith.addf %478, %481 : vector<8x50xf32>
    %cst_76 = arith.constant 0.000000e+00 : f32
    %483 = vector.broadcast %cst_76 : f32 to vector<8x50xf32>
    %484 = arith.cmpf ogt, %482, %483 : vector<8x50xf32>
    %cst_77 = arith.constant 0.00999999977 : f32
    %485 = vector.broadcast %cst_77 : f32 to vector<8x50xf32>
    %486 = arith.mulf %485, %482 : vector<8x50xf32>
    %487 = arith.select %484, %482, %486 : vector<8x50xi1>, vector<8x50xf32>
    %488 = tpu.concatenate %262, %307, %352, %397, %442, %487 in 1 : vector<8x50xf32>, vector<8x50xf32>, vector<8x50xf32>, vector<8x50xf32>, vector<8x50xf32>, vector<8x50xf32> -> vector<8x300xf32>
    %c0_78 = arith.constant 0 : index
    %c0_79 = arith.constant 0 : index
    %489 = vector.load %arg6[%c0_78, %c0_79] : memref<300x48xf32, #tpu.memory_space<vmem>>, vector<300x48xf32>
    %cst_80 = arith.constant dense<0.000000e+00> : vector<8x48xf32>
    %490 = tpu.matmul %488, %489, %cst_80 {dimension_numbers = #tpu.dot_dimension_numbers<[1], [0], [0], [1], [0, 0, 1, 1], [], []>} : vector<8x300xf32>, vector<300x48xf32>, vector<8x48xf32> -> vector<8x48xf32>
    %c0_81 = arith.constant 0 : index
    %c0_82 = arith.constant 0 : index
    %491 = vector.load %arg8[%c0_81, %c0_82] : memref<1x48xf32, #tpu.memory_space<vmem>>, vector<1x48xf32>
    %492 = vector.broadcast %491 : vector<1x48xf32> to vector<8x48xf32>
    %493 = arith.addf %490, %492 : vector<8x48xf32>
    %c0_83 = arith.constant 0 : index
    %c0_84 = arith.constant 0 : index
    %494 = vector.load %arg7[%c0_83, %c0_84] : memref<16x48xf32, #tpu.memory_space<vmem>>, vector<16x48xf32>
    %c0_85 = arith.constant 0 : index
    %c0_86 = arith.constant 0 : index
    %495 = vector.load %arg9[%c0_85, %c0_86] : memref<1x48xf32, #tpu.memory_space<vmem>>, vector<1x48xf32>
    %496 = vector.extract_strided_slice %493 {offsets = [0, 0], sizes = [1, 48], strides = [1, 1]} : vector<8x48xf32> to vector<1x48xf32>
    %497 = vector.extract_strided_slice %496 {offsets = [0, 0], sizes = [1, 16], strides = [1, 1]} : vector<1x48xf32> to vector<1x16xf32>
    %498 = vector.extract_strided_slice %495 {offsets = [0, 0], sizes = [1, 16], strides = [1, 1]} : vector<1x48xf32> to vector<1x16xf32>
    %499 = arith.addf %497, %498 : vector<1x16xf32>
    %cst_87 = arith.constant 5.000000e-01 : f32
    %500 = vector.broadcast %cst_87 : f32 to vector<1x16xf32>
    %501 = arith.mulf %500, %499 : vector<1x16xf32>
    %502 = math.tanh %501 : vector<1x16xf32>
    %cst_88 = arith.constant 1.000000e+00 : f32
    %503 = vector.broadcast %cst_88 : f32 to vector<1x16xf32>
    %504 = arith.addf %502, %503 : vector<1x16xf32>
    %cst_89 = arith.constant 5.000000e-01 : f32
    %505 = vector.broadcast %cst_89 : f32 to vector<1x16xf32>
    %506 = arith.mulf %505, %504 : vector<1x16xf32>
    %507 = vector.extract_strided_slice %496 {offsets = [0, 16], sizes = [1, 16], strides = [1, 1]} : vector<1x48xf32> to vector<1x16xf32>
    %508 = vector.extract_strided_slice %495 {offsets = [0, 16], sizes = [1, 16], strides = [1, 1]} : vector<1x48xf32> to vector<1x16xf32>
    %509 = arith.addf %507, %508 : vector<1x16xf32>
    %cst_90 = arith.constant 5.000000e-01 : f32
    %510 = vector.broadcast %cst_90 : f32 to vector<1x16xf32>
    %511 = arith.mulf %510, %509 : vector<1x16xf32>
    %512 = math.tanh %511 : vector<1x16xf32>
    %cst_91 = arith.constant 1.000000e+00 : f32
    %513 = vector.broadcast %cst_91 : f32 to vector<1x16xf32>
    %514 = arith.addf %512, %513 : vector<1x16xf32>
    %cst_92 = arith.constant 5.000000e-01 : f32
    %515 = vector.broadcast %cst_92 : f32 to vector<1x16xf32>
    %516 = arith.mulf %515, %514 : vector<1x16xf32>
    %517 = vector.extract_strided_slice %496 {offsets = [0, 32], sizes = [1, 16], strides = [1, 1]} : vector<1x48xf32> to vector<1x16xf32>
    %518 = vector.extract_strided_slice %495 {offsets = [0, 32], sizes = [1, 16], strides = [1, 1]} : vector<1x48xf32> to vector<1x16xf32>
    %519 = arith.mulf %506, %518 : vector<1x16xf32>
    %520 = arith.addf %517, %519 : vector<1x16xf32>
    %521 = math.tanh %520 : vector<1x16xf32>
    %cst_93 = arith.constant 1.000000e+00 : f32
    %522 = vector.broadcast %cst_93 : f32 to vector<1x16xf32>
    %523 = arith.subf %522, %516 : vector<1x16xf32>
    %524 = arith.mulf %523, %521 : vector<1x16xf32>
    %c0_94 = arith.constant 0 : index
    %c0_95 = arith.constant 0 : index
    %c0_96 = arith.constant 0 : index
    %525 = vector.load %arg10[%c0_94, %c0_95, %c0_96] : memref<1x8x16xf32, #tpu.memory_space<vmem>>, vector<1x1x16xf32>
    %526 = vector.shape_cast %525 : vector<1x1x16xf32> to vector<1x16xf32>
    %527 = vector.shape_cast %524 : vector<1x16xf32> to vector<1x1x16xf32>
    tpu.vector_store %arg10[%c0_94, %c0_95, %c0_96], %527 {strides = array<i32>} : memref<1x8x16xf32, #tpu.memory_space<vmem>>, vector<1x1x16xf32>,
    %528 = vector.extract_strided_slice %493 {offsets = [1, 0], sizes = [1, 48], strides = [1, 1]} : vector<8x48xf32> to vector<1x48xf32>
    %cst_97 = arith.constant dense<0.000000e+00> : vector<1x48xf32>
    %529 = tpu.matmul %524, %494, %cst_97 {dimension_numbers = #tpu.dot_dimension_numbers<[1], [0], [0], [1], [0, 0, 1, 1], [], []>} : vector<1x16xf32>, vector<16x48xf32>, vector<1x48xf32> -> vector<1x48xf32>
    %530 = arith.addf %529, %495 : vector<1x48xf32>
    %531 = vector.extract_strided_slice %528 {offsets = [0, 0], sizes = [1, 16], strides = [1, 1]} : vector<1x48xf32> to vector<1x16xf32>
    %532 = vector.extract_strided_slice %530 {offsets = [0, 0], sizes = [1, 16], strides = [1, 1]} : vector<1x48xf32> to vector<1x16xf32>
    %533 = arith.addf %531, %532 : vector<1x16xf32>
    %cst_98 = arith.constant 5.000000e-01 : f32
    %534 = vector.broadcast %cst_98 : f32 to vector<1x16xf32>
    %535 = arith.mulf %534, %533 : vector<1x16xf32>
    %536 = math.tanh %535 : vector<1x16xf32>
    %cst_99 = arith.constant 1.000000e+00 : f32
    %537 = vector.broadcast %cst_99 : f32 to vector<1x16xf32>
    %538 = arith.addf %536, %537 : vector<1x16xf32>
    %cst_100 = arith.constant 5.000000e-01 : f32
    %539 = vector.broadcast %cst_100 : f32 to vector<1x16xf32>
    %540 = arith.mulf %539, %538 : vector<1x16xf32>
    %541 = vector.extract_strided_slice %528 {offsets = [0, 16], sizes = [1, 16], strides = [1, 1]} : vector<1x48xf32> to vector<1x16xf32>
    %542 = vector.extract_strided_slice %530 {offsets = [0, 16], sizes = [1, 16], strides = [1, 1]} : vector<1x48xf32> to vector<1x16xf32>
    %543 = arith.addf %541, %542 : vector<1x16xf32>
    %cst_101 = arith.constant 5.000000e-01 : f32
    %544 = vector.broadcast %cst_101 : f32 to vector<1x16xf32>
    %545 = arith.mulf %544, %543 : vector<1x16xf32>
    %546 = math.tanh %545 : vector<1x16xf32>
    %cst_102 = arith.constant 1.000000e+00 : f32
    %547 = vector.broadcast %cst_102 : f32 to vector<1x16xf32>
    %548 = arith.addf %546, %547 : vector<1x16xf32>
    %cst_103 = arith.constant 5.000000e-01 : f32
    %549 = vector.broadcast %cst_103 : f32 to vector<1x16xf32>
    %550 = arith.mulf %549, %548 : vector<1x16xf32>
    %551 = vector.extract_strided_slice %528 {offsets = [0, 32], sizes = [1, 16], strides = [1, 1]} : vector<1x48xf32> to vector<1x16xf32>
    %552 = vector.extract_strided_slice %530 {offsets = [0, 32], sizes = [1, 16], strides = [1, 1]} : vector<1x48xf32> to vector<1x16xf32>
    %553 = arith.mulf %540, %552 : vector<1x16xf32>
    %554 = arith.addf %551, %553 : vector<1x16xf32>
    %555 = math.tanh %554 : vector<1x16xf32>
    %cst_104 = arith.constant 1.000000e+00 : f32
    %556 = vector.broadcast %cst_104 : f32 to vector<1x16xf32>
    %557 = arith.subf %556, %550 : vector<1x16xf32>
    %558 = arith.mulf %557, %555 : vector<1x16xf32>
    %559 = arith.mulf %550, %524 : vector<1x16xf32>
    %560 = arith.addf %558, %559 : vector<1x16xf32>
    %c0_105 = arith.constant 0 : index
    %c1_106 = arith.constant 1 : index
    %c0_107 = arith.constant 0 : index
    %561 = vector.load %arg10[%c0_105, %c1_106, %c0_107] : memref<1x8x16xf32, #tpu.memory_space<vmem>>, vector<1x1x16xf32>
    %562 = vector.shape_cast %561 : vector<1x1x16xf32> to vector<1x16xf32>
    %563 = vector.shape_cast %560 : vector<1x16xf32> to vector<1x1x16xf32>
    tpu.vector_store %arg10[%c0_105, %c1_106, %c0_107], %563 {strides = array<i32>} : memref<1x8x16xf32, #tpu.memory_space<vmem>>, vector<1x1x16xf32>,
    %564 = vector.extract_strided_slice %493 {offsets = [2, 0], sizes = [1, 48], strides = [1, 1]} : vector<8x48xf32> to vector<1x48xf32>
    %cst_108 = arith.constant dense<0.000000e+00> : vector<1x48xf32>
    %565 = tpu.matmul %560, %494, %cst_108 {dimension_numbers = #tpu.dot_dimension_numbers<[1], [0], [0], [1], [0, 0, 1, 1], [], []>} : vector<1x16xf32>, vector<16x48xf32>, vector<1x48xf32> -> vector<1x48xf32>
    %566 = arith.addf %565, %495 : vector<1x48xf32>
    %567 = vector.extract_strided_slice %564 {offsets = [0, 0], sizes = [1, 16], strides = [1, 1]} : vector<1x48xf32> to vector<1x16xf32>
    %568 = vector.extract_strided_slice %566 {offsets = [0, 0], sizes = [1, 16], strides = [1, 1]} : vector<1x48xf32> to vector<1x16xf32>
    %569 = arith.addf %567, %568 : vector<1x16xf32>
    %cst_109 = arith.constant 5.000000e-01 : f32
    %570 = vector.broadcast %cst_109 : f32 to vector<1x16xf32>
    %571 = arith.mulf %570, %569 : vector<1x16xf32>
    %572 = math.tanh %571 : vector<1x16xf32>
    %cst_110 = arith.constant 1.000000e+00 : f32
    %573 = vector.broadcast %cst_110 : f32 to vector<1x16xf32>
    %574 = arith.addf %572, %573 : vector<1x16xf32>
    %cst_111 = arith.constant 5.000000e-01 : f32
    %575 = vector.broadcast %cst_111 : f32 to vector<1x16xf32>
    %576 = arith.mulf %575, %574 : vector<1x16xf32>
    %577 = vector.extract_strided_slice %564 {offsets = [0, 16], sizes = [1, 16], strides = [1, 1]} : vector<1x48xf32> to vector<1x16xf32>
    %578 = vector.extract_strided_slice %566 {offsets = [0, 16], sizes = [1, 16], strides = [1, 1]} : vector<1x48xf32> to vector<1x16xf32>
    %579 = arith.addf %577, %578 : vector<1x16xf32>
    %cst_112 = arith.constant 5.000000e-01 : f32
    %580 = vector.broadcast %cst_112 : f32 to vector<1x16xf32>
    %581 = arith.mulf %580, %579 : vector<1x16xf32>
    %582 = math.tanh %581 : vector<1x16xf32>
    %cst_113 = arith.constant 1.000000e+00 : f32
    %583 = vector.broadcast %cst_113 : f32 to vector<1x16xf32>
    %584 = arith.addf %582, %583 : vector<1x16xf32>
    %cst_114 = arith.constant 5.000000e-01 : f32
    %585 = vector.broadcast %cst_114 : f32 to vector<1x16xf32>
    %586 = arith.mulf %585, %584 : vector<1x16xf32>
    %587 = vector.extract_strided_slice %564 {offsets = [0, 32], sizes = [1, 16], strides = [1, 1]} : vector<1x48xf32> to vector<1x16xf32>
    %588 = vector.extract_strided_slice %566 {offsets = [0, 32], sizes = [1, 16], strides = [1, 1]} : vector<1x48xf32> to vector<1x16xf32>
    %589 = arith.mulf %576, %588 : vector<1x16xf32>
    %590 = arith.addf %587, %589 : vector<1x16xf32>
    %591 = math.tanh %590 : vector<1x16xf32>
    %cst_115 = arith.constant 1.000000e+00 : f32
    %592 = vector.broadcast %cst_115 : f32 to vector<1x16xf32>
    %593 = arith.subf %592, %586 : vector<1x16xf32>
    %594 = arith.mulf %593, %591 : vector<1x16xf32>
    %595 = arith.mulf %586, %560 : vector<1x16xf32>
    %596 = arith.addf %594, %595 : vector<1x16xf32>
    %c0_116 = arith.constant 0 : index
    %c2_117 = arith.constant 2 : index
    %c0_118 = arith.constant 0 : index
    %597 = vector.load %arg10[%c0_116, %c2_117, %c0_118] : memref<1x8x16xf32, #tpu.memory_space<vmem>>, vector<1x1x16xf32>
    %598 = vector.shape_cast %597 : vector<1x1x16xf32> to vector<1x16xf32>
    %599 = vector.shape_cast %596 : vector<1x16xf32> to vector<1x1x16xf32>
    tpu.vector_store %arg10[%c0_116, %c2_117, %c0_118], %599 {strides = array<i32>} : memref<1x8x16xf32, #tpu.memory_space<vmem>>, vector<1x1x16xf32>,
    %600 = vector.extract_strided_slice %493 {offsets = [3, 0], sizes = [1, 48], strides = [1, 1]} : vector<8x48xf32> to vector<1x48xf32>
    %cst_119 = arith.constant dense<0.000000e+00> : vector<1x48xf32>
    %601 = tpu.matmul %596, %494, %cst_119 {dimension_numbers = #tpu.dot_dimension_numbers<[1], [0], [0], [1], [0, 0, 1, 1], [], []>} : vector<1x16xf32>, vector<16x48xf32>, vector<1x48xf32> -> vector<1x48xf32>
    %602 = arith.addf %601, %495 : vector<1x48xf32>
    %603 = vector.extract_strided_slice %600 {offsets = [0, 0], sizes = [1, 16], strides = [1, 1]} : vector<1x48xf32> to vector<1x16xf32>
    %604 = vector.extract_strided_slice %602 {offsets = [0, 0], sizes = [1, 16], strides = [1, 1]} : vector<1x48xf32> to vector<1x16xf32>
    %605 = arith.addf %603, %604 : vector<1x16xf32>
    %cst_120 = arith.constant 5.000000e-01 : f32
    %606 = vector.broadcast %cst_120 : f32 to vector<1x16xf32>
    %607 = arith.mulf %606, %605 : vector<1x16xf32>
    %608 = math.tanh %607 : vector<1x16xf32>
    %cst_121 = arith.constant 1.000000e+00 : f32
    %609 = vector.broadcast %cst_121 : f32 to vector<1x16xf32>
    %610 = arith.addf %608, %609 : vector<1x16xf32>
    %cst_122 = arith.constant 5.000000e-01 : f32
    %611 = vector.broadcast %cst_122 : f32 to vector<1x16xf32>
    %612 = arith.mulf %611, %610 : vector<1x16xf32>
    %613 = vector.extract_strided_slice %600 {offsets = [0, 16], sizes = [1, 16], strides = [1, 1]} : vector<1x48xf32> to vector<1x16xf32>
    %614 = vector.extract_strided_slice %602 {offsets = [0, 16], sizes = [1, 16], strides = [1, 1]} : vector<1x48xf32> to vector<1x16xf32>
    %615 = arith.addf %613, %614 : vector<1x16xf32>
    %cst_123 = arith.constant 5.000000e-01 : f32
    %616 = vector.broadcast %cst_123 : f32 to vector<1x16xf32>
    %617 = arith.mulf %616, %615 : vector<1x16xf32>
    %618 = math.tanh %617 : vector<1x16xf32>
    %cst_124 = arith.constant 1.000000e+00 : f32
    %619 = vector.broadcast %cst_124 : f32 to vector<1x16xf32>
    %620 = arith.addf %618, %619 : vector<1x16xf32>
    %cst_125 = arith.constant 5.000000e-01 : f32
    %621 = vector.broadcast %cst_125 : f32 to vector<1x16xf32>
    %622 = arith.mulf %621, %620 : vector<1x16xf32>
    %623 = vector.extract_strided_slice %600 {offsets = [0, 32], sizes = [1, 16], strides = [1, 1]} : vector<1x48xf32> to vector<1x16xf32>
    %624 = vector.extract_strided_slice %602 {offsets = [0, 32], sizes = [1, 16], strides = [1, 1]} : vector<1x48xf32> to vector<1x16xf32>
    %625 = arith.mulf %612, %624 : vector<1x16xf32>
    %626 = arith.addf %623, %625 : vector<1x16xf32>
    %627 = math.tanh %626 : vector<1x16xf32>
    %cst_126 = arith.constant 1.000000e+00 : f32
    %628 = vector.broadcast %cst_126 : f32 to vector<1x16xf32>
    %629 = arith.subf %628, %622 : vector<1x16xf32>
    %630 = arith.mulf %629, %627 : vector<1x16xf32>
    %631 = arith.mulf %622, %596 : vector<1x16xf32>
    %632 = arith.addf %630, %631 : vector<1x16xf32>
    %c0_127 = arith.constant 0 : index
    %c3_128 = arith.constant 3 : index
    %c0_129 = arith.constant 0 : index
    %633 = vector.load %arg10[%c0_127, %c3_128, %c0_129] : memref<1x8x16xf32, #tpu.memory_space<vmem>>, vector<1x1x16xf32>
    %634 = vector.shape_cast %633 : vector<1x1x16xf32> to vector<1x16xf32>
    %635 = vector.shape_cast %632 : vector<1x16xf32> to vector<1x1x16xf32>
    tpu.vector_store %arg10[%c0_127, %c3_128, %c0_129], %635 {strides = array<i32>} : memref<1x8x16xf32, #tpu.memory_space<vmem>>, vector<1x1x16xf32>,
    %636 = vector.extract_strided_slice %493 {offsets = [4, 0], sizes = [1, 48], strides = [1, 1]} : vector<8x48xf32> to vector<1x48xf32>
    %cst_130 = arith.constant dense<0.000000e+00> : vector<1x48xf32>
    %637 = tpu.matmul %632, %494, %cst_130 {dimension_numbers = #tpu.dot_dimension_numbers<[1], [0], [0], [1], [0, 0, 1, 1], [], []>} : vector<1x16xf32>, vector<16x48xf32>, vector<1x48xf32> -> vector<1x48xf32>
    %638 = arith.addf %637, %495 : vector<1x48xf32>
    %639 = vector.extract_strided_slice %636 {offsets = [0, 0], sizes = [1, 16], strides = [1, 1]} : vector<1x48xf32> to vector<1x16xf32>
    %640 = vector.extract_strided_slice %638 {offsets = [0, 0], sizes = [1, 16], strides = [1, 1]} : vector<1x48xf32> to vector<1x16xf32>
    %641 = arith.addf %639, %640 : vector<1x16xf32>
    %cst_131 = arith.constant 5.000000e-01 : f32
    %642 = vector.broadcast %cst_131 : f32 to vector<1x16xf32>
    %643 = arith.mulf %642, %641 : vector<1x16xf32>
    %644 = math.tanh %643 : vector<1x16xf32>
    %cst_132 = arith.constant 1.000000e+00 : f32
    %645 = vector.broadcast %cst_132 : f32 to vector<1x16xf32>
    %646 = arith.addf %644, %645 : vector<1x16xf32>
    %cst_133 = arith.constant 5.000000e-01 : f32
    %647 = vector.broadcast %cst_133 : f32 to vector<1x16xf32>
    %648 = arith.mulf %647, %646 : vector<1x16xf32>
    %649 = vector.extract_strided_slice %636 {offsets = [0, 16], sizes = [1, 16], strides = [1, 1]} : vector<1x48xf32> to vector<1x16xf32>
    %650 = vector.extract_strided_slice %638 {offsets = [0, 16], sizes = [1, 16], strides = [1, 1]} : vector<1x48xf32> to vector<1x16xf32>
    %651 = arith.addf %649, %650 : vector<1x16xf32>
    %cst_134 = arith.constant 5.000000e-01 : f32
    %652 = vector.broadcast %cst_134 : f32 to vector<1x16xf32>
    %653 = arith.mulf %652, %651 : vector<1x16xf32>
    %654 = math.tanh %653 : vector<1x16xf32>
    %cst_135 = arith.constant 1.000000e+00 : f32
    %655 = vector.broadcast %cst_135 : f32 to vector<1x16xf32>
    %656 = arith.addf %654, %655 : vector<1x16xf32>
    %cst_136 = arith.constant 5.000000e-01 : f32
    %657 = vector.broadcast %cst_136 : f32 to vector<1x16xf32>
    %658 = arith.mulf %657, %656 : vector<1x16xf32>
    %659 = vector.extract_strided_slice %636 {offsets = [0, 32], sizes = [1, 16], strides = [1, 1]} : vector<1x48xf32> to vector<1x16xf32>
    %660 = vector.extract_strided_slice %638 {offsets = [0, 32], sizes = [1, 16], strides = [1, 1]} : vector<1x48xf32> to vector<1x16xf32>
    %661 = arith.mulf %648, %660 : vector<1x16xf32>
    %662 = arith.addf %659, %661 : vector<1x16xf32>
    %663 = math.tanh %662 : vector<1x16xf32>
    %cst_137 = arith.constant 1.000000e+00 : f32
    %664 = vector.broadcast %cst_137 : f32 to vector<1x16xf32>
    %665 = arith.subf %664, %658 : vector<1x16xf32>
    %666 = arith.mulf %665, %663 : vector<1x16xf32>
    %667 = arith.mulf %658, %632 : vector<1x16xf32>
    %668 = arith.addf %666, %667 : vector<1x16xf32>
    %c0_138 = arith.constant 0 : index
    %c4_139 = arith.constant 4 : index
    %c0_140 = arith.constant 0 : index
    %669 = vector.load %arg10[%c0_138, %c4_139, %c0_140] : memref<1x8x16xf32, #tpu.memory_space<vmem>>, vector<1x1x16xf32>
    %670 = vector.shape_cast %669 : vector<1x1x16xf32> to vector<1x16xf32>
    %671 = vector.shape_cast %668 : vector<1x16xf32> to vector<1x1x16xf32>
    tpu.vector_store %arg10[%c0_138, %c4_139, %c0_140], %671 {strides = array<i32>} : memref<1x8x16xf32, #tpu.memory_space<vmem>>, vector<1x1x16xf32>,
    %672 = vector.extract_strided_slice %493 {offsets = [5, 0], sizes = [1, 48], strides = [1, 1]} : vector<8x48xf32> to vector<1x48xf32>
    %cst_141 = arith.constant dense<0.000000e+00> : vector<1x48xf32>
    %673 = tpu.matmul %668, %494, %cst_141 {dimension_numbers = #tpu.dot_dimension_numbers<[1], [0], [0], [1], [0, 0, 1, 1], [], []>} : vector<1x16xf32>, vector<16x48xf32>, vector<1x48xf32> -> vector<1x48xf32>
    %674 = arith.addf %673, %495 : vector<1x48xf32>
    %675 = vector.extract_strided_slice %672 {offsets = [0, 0], sizes = [1, 16], strides = [1, 1]} : vector<1x48xf32> to vector<1x16xf32>
    %676 = vector.extract_strided_slice %674 {offsets = [0, 0], sizes = [1, 16], strides = [1, 1]} : vector<1x48xf32> to vector<1x16xf32>
    %677 = arith.addf %675, %676 : vector<1x16xf32>
    %cst_142 = arith.constant 5.000000e-01 : f32
    %678 = vector.broadcast %cst_142 : f32 to vector<1x16xf32>
    %679 = arith.mulf %678, %677 : vector<1x16xf32>
    %680 = math.tanh %679 : vector<1x16xf32>
    %cst_143 = arith.constant 1.000000e+00 : f32
    %681 = vector.broadcast %cst_143 : f32 to vector<1x16xf32>
    %682 = arith.addf %680, %681 : vector<1x16xf32>
    %cst_144 = arith.constant 5.000000e-01 : f32
    %683 = vector.broadcast %cst_144 : f32 to vector<1x16xf32>
    %684 = arith.mulf %683, %682 : vector<1x16xf32>
    %685 = vector.extract_strided_slice %672 {offsets = [0, 16], sizes = [1, 16], strides = [1, 1]} : vector<1x48xf32> to vector<1x16xf32>
    %686 = vector.extract_strided_slice %674 {offsets = [0, 16], sizes = [1, 16], strides = [1, 1]} : vector<1x48xf32> to vector<1x16xf32>
    %687 = arith.addf %685, %686 : vector<1x16xf32>
    %cst_145 = arith.constant 5.000000e-01 : f32
    %688 = vector.broadcast %cst_145 : f32 to vector<1x16xf32>
    %689 = arith.mulf %688, %687 : vector<1x16xf32>
    %690 = math.tanh %689 : vector<1x16xf32>
    %cst_146 = arith.constant 1.000000e+00 : f32
    %691 = vector.broadcast %cst_146 : f32 to vector<1x16xf32>
    %692 = arith.addf %690, %691 : vector<1x16xf32>
    %cst_147 = arith.constant 5.000000e-01 : f32
    %693 = vector.broadcast %cst_147 : f32 to vector<1x16xf32>
    %694 = arith.mulf %693, %692 : vector<1x16xf32>
    %695 = vector.extract_strided_slice %672 {offsets = [0, 32], sizes = [1, 16], strides = [1, 1]} : vector<1x48xf32> to vector<1x16xf32>
    %696 = vector.extract_strided_slice %674 {offsets = [0, 32], sizes = [1, 16], strides = [1, 1]} : vector<1x48xf32> to vector<1x16xf32>
    %697 = arith.mulf %684, %696 : vector<1x16xf32>
    %698 = arith.addf %695, %697 : vector<1x16xf32>
    %699 = math.tanh %698 : vector<1x16xf32>
    %cst_148 = arith.constant 1.000000e+00 : f32
    %700 = vector.broadcast %cst_148 : f32 to vector<1x16xf32>
    %701 = arith.subf %700, %694 : vector<1x16xf32>
    %702 = arith.mulf %701, %699 : vector<1x16xf32>
    %703 = arith.mulf %694, %668 : vector<1x16xf32>
    %704 = arith.addf %702, %703 : vector<1x16xf32>
    %c0_149 = arith.constant 0 : index
    %c5_150 = arith.constant 5 : index
    %c0_151 = arith.constant 0 : index
    %705 = vector.load %arg10[%c0_149, %c5_150, %c0_151] : memref<1x8x16xf32, #tpu.memory_space<vmem>>, vector<1x1x16xf32>
    %706 = vector.shape_cast %705 : vector<1x1x16xf32> to vector<1x16xf32>
    %707 = vector.shape_cast %704 : vector<1x16xf32> to vector<1x1x16xf32>
    tpu.vector_store %arg10[%c0_149, %c5_150, %c0_151], %707 {strides = array<i32>} : memref<1x8x16xf32, #tpu.memory_space<vmem>>, vector<1x1x16xf32>,
    %708 = vector.extract_strided_slice %493 {offsets = [6, 0], sizes = [1, 48], strides = [1, 1]} : vector<8x48xf32> to vector<1x48xf32>
    %cst_152 = arith.constant dense<0.000000e+00> : vector<1x48xf32>
    %709 = tpu.matmul %704, %494, %cst_152 {dimension_numbers = #tpu.dot_dimension_numbers<[1], [0], [0], [1], [0, 0, 1, 1], [], []>} : vector<1x16xf32>, vector<16x48xf32>, vector<1x48xf32> -> vector<1x48xf32>
    %710 = arith.addf %709, %495 : vector<1x48xf32>
    %711 = vector.extract_strided_slice %708 {offsets = [0, 0], sizes = [1, 16], strides = [1, 1]} : vector<1x48xf32> to vector<1x16xf32>
    %712 = vector.extract_strided_slice %710 {offsets = [0, 0], sizes = [1, 16], strides = [1, 1]} : vector<1x48xf32> to vector<1x16xf32>
    %713 = arith.addf %711, %712 : vector<1x16xf32>
    %cst_153 = arith.constant 5.000000e-01 : f32
    %714 = vector.broadcast %cst_153 : f32 to vector<1x16xf32>
    %715 = arith.mulf %714, %713 : vector<1x16xf32>
    %716 = math.tanh %715 : vector<1x16xf32>
    %cst_154 = arith.constant 1.000000e+00 : f32
    %717 = vector.broadcast %cst_154 : f32 to vector<1x16xf32>
    %718 = arith.addf %716, %717 : vector<1x16xf32>
    %cst_155 = arith.constant 5.000000e-01 : f32
    %719 = vector.broadcast %cst_155 : f32 to vector<1x16xf32>
    %720 = arith.mulf %719, %718 : vector<1x16xf32>
    %721 = vector.extract_strided_slice %708 {offsets = [0, 16], sizes = [1, 16], strides = [1, 1]} : vector<1x48xf32> to vector<1x16xf32>
    %722 = vector.extract_strided_slice %710 {offsets = [0, 16], sizes = [1, 16], strides = [1, 1]} : vector<1x48xf32> to vector<1x16xf32>
    %723 = arith.addf %721, %722 : vector<1x16xf32>
    %cst_156 = arith.constant 5.000000e-01 : f32
    %724 = vector.broadcast %cst_156 : f32 to vector<1x16xf32>
    %725 = arith.mulf %724, %723 : vector<1x16xf32>
    %726 = math.tanh %725 : vector<1x16xf32>
    %cst_157 = arith.constant 1.000000e+00 : f32
    %727 = vector.broadcast %cst_157 : f32 to vector<1x16xf32>
    %728 = arith.addf %726, %727 : vector<1x16xf32>
    %cst_158 = arith.constant 5.000000e-01 : f32
    %729 = vector.broadcast %cst_158 : f32 to vector<1x16xf32>
    %730 = arith.mulf %729, %728 : vector<1x16xf32>
    %731 = vector.extract_strided_slice %708 {offsets = [0, 32], sizes = [1, 16], strides = [1, 1]} : vector<1x48xf32> to vector<1x16xf32>
    %732 = vector.extract_strided_slice %710 {offsets = [0, 32], sizes = [1, 16], strides = [1, 1]} : vector<1x48xf32> to vector<1x16xf32>
    %733 = arith.mulf %720, %732 : vector<1x16xf32>
    %734 = arith.addf %731, %733 : vector<1x16xf32>
    %735 = math.tanh %734 : vector<1x16xf32>
    %cst_159 = arith.constant 1.000000e+00 : f32
    %736 = vector.broadcast %cst_159 : f32 to vector<1x16xf32>
    %737 = arith.subf %736, %730 : vector<1x16xf32>
    %738 = arith.mulf %737, %735 : vector<1x16xf32>
    %739 = arith.mulf %730, %704 : vector<1x16xf32>
    %740 = arith.addf %738, %739 : vector<1x16xf32>
    %c0_160 = arith.constant 0 : index
    %c6_161 = arith.constant 6 : index
    %c0_162 = arith.constant 0 : index
    %741 = vector.load %arg10[%c0_160, %c6_161, %c0_162] : memref<1x8x16xf32, #tpu.memory_space<vmem>>, vector<1x1x16xf32>
    %742 = vector.shape_cast %741 : vector<1x1x16xf32> to vector<1x16xf32>
    %743 = vector.shape_cast %740 : vector<1x16xf32> to vector<1x1x16xf32>
    tpu.vector_store %arg10[%c0_160, %c6_161, %c0_162], %743 {strides = array<i32>} : memref<1x8x16xf32, #tpu.memory_space<vmem>>, vector<1x1x16xf32>,
    %744 = vector.extract_strided_slice %493 {offsets = [7, 0], sizes = [1, 48], strides = [1, 1]} : vector<8x48xf32> to vector<1x48xf32>
    %cst_163 = arith.constant dense<0.000000e+00> : vector<1x48xf32>
    %745 = tpu.matmul %740, %494, %cst_163 {dimension_numbers = #tpu.dot_dimension_numbers<[1], [0], [0], [1], [0, 0, 1, 1], [], []>} : vector<1x16xf32>, vector<16x48xf32>, vector<1x48xf32> -> vector<1x48xf32>
    %746 = arith.addf %745, %495 : vector<1x48xf32>
    %747 = vector.extract_strided_slice %744 {offsets = [0, 0], sizes = [1, 16], strides = [1, 1]} : vector<1x48xf32> to vector<1x16xf32>
    %748 = vector.extract_strided_slice %746 {offsets = [0, 0], sizes = [1, 16], strides = [1, 1]} : vector<1x48xf32> to vector<1x16xf32>
    %749 = arith.addf %747, %748 : vector<1x16xf32>
    %cst_164 = arith.constant 5.000000e-01 : f32
    %750 = vector.broadcast %cst_164 : f32 to vector<1x16xf32>
    %751 = arith.mulf %750, %749 : vector<1x16xf32>
    %752 = math.tanh %751 : vector<1x16xf32>
    %cst_165 = arith.constant 1.000000e+00 : f32
    %753 = vector.broadcast %cst_165 : f32 to vector<1x16xf32>
    %754 = arith.addf %752, %753 : vector<1x16xf32>
    %cst_166 = arith.constant 5.000000e-01 : f32
    %755 = vector.broadcast %cst_166 : f32 to vector<1x16xf32>
    %756 = arith.mulf %755, %754 : vector<1x16xf32>
    %757 = vector.extract_strided_slice %744 {offsets = [0, 16], sizes = [1, 16], strides = [1, 1]} : vector<1x48xf32> to vector<1x16xf32>
    %758 = vector.extract_strided_slice %746 {offsets = [0, 16], sizes = [1, 16], strides = [1, 1]} : vector<1x48xf32> to vector<1x16xf32>
    %759 = arith.addf %757, %758 : vector<1x16xf32>
    %cst_167 = arith.constant 5.000000e-01 : f32
    %760 = vector.broadcast %cst_167 : f32 to vector<1x16xf32>
    %761 = arith.mulf %760, %759 : vector<1x16xf32>
    %762 = math.tanh %761 : vector<1x16xf32>
    %cst_168 = arith.constant 1.000000e+00 : f32
    %763 = vector.broadcast %cst_168 : f32 to vector<1x16xf32>
    %764 = arith.addf %762, %763 : vector<1x16xf32>
    %cst_169 = arith.constant 5.000000e-01 : f32
    %765 = vector.broadcast %cst_169 : f32 to vector<1x16xf32>
    %766 = arith.mulf %765, %764 : vector<1x16xf32>
    %767 = vector.extract_strided_slice %744 {offsets = [0, 32], sizes = [1, 16], strides = [1, 1]} : vector<1x48xf32> to vector<1x16xf32>
    %768 = vector.extract_strided_slice %746 {offsets = [0, 32], sizes = [1, 16], strides = [1, 1]} : vector<1x48xf32> to vector<1x16xf32>
    %769 = arith.mulf %756, %768 : vector<1x16xf32>
    %770 = arith.addf %767, %769 : vector<1x16xf32>
    %771 = math.tanh %770 : vector<1x16xf32>
    %cst_170 = arith.constant 1.000000e+00 : f32
    %772 = vector.broadcast %cst_170 : f32 to vector<1x16xf32>
    %773 = arith.subf %772, %766 : vector<1x16xf32>
    %774 = arith.mulf %773, %771 : vector<1x16xf32>
    %775 = arith.mulf %766, %740 : vector<1x16xf32>
    %776 = arith.addf %774, %775 : vector<1x16xf32>
    %c0_171 = arith.constant 0 : index
    %c7_172 = arith.constant 7 : index
    %c0_173 = arith.constant 0 : index
    %777 = vector.load %arg10[%c0_171, %c7_172, %c0_173] : memref<1x8x16xf32, #tpu.memory_space<vmem>>, vector<1x1x16xf32>
    %778 = vector.shape_cast %777 : vector<1x1x16xf32> to vector<1x16xf32>
    %779 = vector.shape_cast %776 : vector<1x16xf32> to vector<1x1x16xf32>
    tpu.vector_store %arg10[%c0_171, %c7_172, %c0_173], %779 {strides = array<i32>} : memref<1x8x16xf32, #tpu.memory_space<vmem>>, vector<1x1x16xf32>,
    return
  }
  func.func @transform_0(%arg0: i32) -> (i32, i32, i32, i32) {
    %c0_i32 = arith.constant 0 : i32
    %c0_i32_0 = arith.constant 0 : i32
    %c0_i32_1 = arith.constant 0 : i32
    %c0_i32_2 = arith.constant 0 : i32
    return %arg0, %c0_i32, %c0_i32_0, %c0_i32_1 : i32, i32, i32, i32
  }
  func.func @transform_1(%arg0: i32) -> i32 {
    %c0_i32 = arith.constant 0 : i32
    %c0_i32_0 = arith.constant 0 : i32
    return %c0_i32 : i32
  }
  func.func @transform_2(%arg0: i32) -> i32 {
    %c0_i32 = arith.constant 0 : i32
    %c0_i32_0 = arith.constant 0 : i32
    return %c0_i32 : i32
  }
  func.func @transform_3(%arg0: i32) -> i32 {
    %c0_i32 = arith.constant 0 : i32
    %c0_i32_0 = arith.constant 0 : i32
    return %c0_i32 : i32
  }
  func.func @transform_4(%arg0: i32) -> i32 {
    %c0_i32 = arith.constant 0 : i32
    %c0_i32_0 = arith.constant 0 : i32
    return %c0_i32 : i32
  }
  func.func @transform_5(%arg0: i32) -> (i32, i32) {
    %c0_i32 = arith.constant 0 : i32
    %c0_i32_0 = arith.constant 0 : i32
    %c0_i32_1 = arith.constant 0 : i32
    return %c0_i32, %c0_i32_0 : i32, i32
  }
  func.func @transform_6(%arg0: i32) -> (i32, i32) {
    %c0_i32 = arith.constant 0 : i32
    %c0_i32_0 = arith.constant 0 : i32
    %c0_i32_1 = arith.constant 0 : i32
    return %c0_i32, %c0_i32_0 : i32, i32
  }
  func.func @transform_7(%arg0: i32) -> (i32, i32) {
    %c0_i32 = arith.constant 0 : i32
    %c0_i32_0 = arith.constant 0 : i32
    %c0_i32_1 = arith.constant 0 : i32
    return %c0_i32, %c0_i32_0 : i32, i32
  }
  func.func @transform_8(%arg0: i32) -> (i32, i32) {
    %c0_i32 = arith.constant 0 : i32
    %c0_i32_0 = arith.constant 0 : i32
    %c0_i32_1 = arith.constant 0 : i32
    return %c0_i32, %c0_i32_0 : i32, i32
  }
  func.func @transform_9(%arg0: i32) -> (i32, i32, i32) {
    %c0_i32 = arith.constant 0 : i32
    %c0_i32_0 = arith.constant 0 : i32
    %c0_i32_1 = arith.constant 0 : i32
    return %arg0, %c0_i32, %c0_i32_0 : i32, i32, i32
  }
}

</mosaic_0001>

<bundles_post_ra>
// kernel: tpu_custom_call.1
= control target key start
LH: loop header
LB: loop body
LE: loop exit
PB: predicated region body
PF: predicated region fallthrough
CT: control target
= control target key end

     0   :  { %s3520_s0 = inlined_call_operand.vmem [shape: f32[2,4,8,54], index: 0, kind: input, shape index: {}]   ;;  %s3521_s1 = inlined_call_operand.vmem [shape: f32[36], index: 1, kind: input, shape index: {}]   ;;  %s3522_s2 = inlined_call_operand.vmem [shape: f32[3], index: 2, kind: input, shape index: {}]   ;;  %s3523_s3 = inlined_call_operand.vmem [shape: f32[54], index: 3, kind: input, shape index: {}]   ;;  %s3524_s4 = inlined_call_operand.vmem [shape: f32[6], index: 4, kind: input, shape index: {}]   ;;  %s3525_s5 = inlined_call_operand.vmem [shape: f32[300,48], index: 5, kind: input, shape index: {}]   ;;  %s3526_s6 = inlined_call_operand.vmem [shape: f32[16,48], index: 6, kind: input, shape index: {}]   ;;  %s3527_s7 = inlined_call_operand.vmem [shape: f32[1,48], index: 7, kind: input, shape index: {}]   ;;  %s3528_s8 = inlined_call_operand.vmem [shape: f32[1,48], index: 8, kind: input, shape index: {}]   ;;  %s3529_s9 = inlined_call_operand.hbm [shape: f32[2,8,16], index: 9, kind: output, shape index: {}]  }
   0x1   :  { %3533 = sst [smem:[#allocation15_spill]] %s3521_s1 }
   0x2   :  { %14 = vsyncpa [#allocation4], 0 }
   0x3   :  { %15 = vsyncpa [#allocation6], 0 }
   0x4   :  { %16 = vsyncpa [#allocation9], 0 }
   0x5   :  { %17 = vsyncpa [#allocation3], 0 }
   0x6   :  { %19 = vsyncpa [#allocation3 + $0x1], 0  ;;  %s2827_s30 = smov 0   ;;  %s2829_s10 = smov 0  }
   0x7   :  { %s2831_s11 = smov 0   ;;  %s2833_s12 = smov 0  }
   0x8 LB: > { %s2848_s13 = sadd.s32 4294967295, %s2756_s12   ;;  %s2181_s14 = sadd.s32 4294967294, %s2756_s12   ;;  %s2756_s12 = sphi %s2833_s12, %s3553_s12   ;;  %s2752_s11 = sphi %s2831_s11, %s3552_s11   ;;  %s2748_s10 = sphi %s2829_s10, %s3551_s10   ;;  %s2744_s30 = sphi %s2827_s30, %s3550_s30  }
   0x9   : > { %s2852_s15 = sadd.s32 1, %s2756_s12   ;;  %s226_s16 = sadd.s32 1, %s2752_s11 }
   0xa   : > { %s223_s17 = ssub.s32 %s2756_s12, %s2852_s15  ;;  %p236_p0 = scmp.ne.s32.totalorder %s2752_s11, %s2748_s10 }
   0xb   : > { %p224_p1 = scmp.eq.s32.totalorder %s223_s17, 0  ;;  %p237_p2 = scmp.eq.s32.totalorder %s2848_s13, 1 }
   0xc   : > { %p242_p3 = scmp.ne.s32.totalorder %s2748_s10, %s2744_s30  ;;  %p243_p4 = scmp.eq.s32.totalorder %s2181_s14, 1 }
   0xd   : > { %s2863_s18 = scalar_select %p224_p1, %s2752_s11, %s226_s16  }
   0xe   : > { %p2865_p5 = por %p237_p2, %p236_p0  ;;  %p2869_p6 = por %p243_p4, %p242_p3 }
   0xf   : > { %p2182_p7 = scmp.ge.s32.totalorder %s2756_s12, 1  ;;  %p250_p8 = scmp.lt.s32.totalorder %s2756_s12, 3 }
  0x10   : > { %s3534_s19 = scalar_select %p2865_p5, 1, 0 }
  0x11   : > { %s3535_s20 = scalar_select %p2869_p6, 1, 0 }
  0x12   : > { %p3530_p9 = scmp.eq.s32.totalorder %s2848_s13, 0  ;;  %p2876_p10 = pnand %p2182_p7, %p250_p8 }
  0x13   : > { %s274_s24 = sshll.u32 %s3522_s2, 4  ;;  %s3537_s1 = sld [smem:[#allocation15_spill]]  ;;  %s275_s24 = int_to_ptr.vmem [resolvable:$true] %s274_s24 }
  0x14   : > { %s3536_s21 = scalar_select %p2876_p10, 1, 0 }
  0x15   : > { %p2514_p11 = pneg %p2876_p10  ;;  %s285_s16 = sshll.u32 %s3523_s3, 4  ;;  %s2897_s16 = int_to_ptr.vmem [resolvable:$true] %s285_s16 }
  0x16   : > { %s296_s23 = sshll.u32 %s3524_s4, 4  ;;  %s2622_s25 = scalar_lea.vmem %s275_s24, 16  ;;  %s297_s23 = int_to_ptr.vmem [resolvable:$true] %s296_s23 }
  0x17   : > { %p2890_p12 = pnand %p3530_p9, %p2514_p11  ;;  %p2623_p13 = scmp.ne.s32.totalorder %s275_s24, %s2622_s25 }
  0x18   : > { %p2630_p3 = scmp.lt.s32.totalorder %s275_s24, %s275_s24  ;;  %p2631_p4 = scmp.lt.s32.totalorder %s2622_s25, %s2622_s25 }
  0x19   : > { %s263_s27 = sshll.u32 %s3537_s1, 4  ;;  %p2624_p0 = pneg %p2890_p12  ;;  %s264_s27 = int_to_ptr.vmem [resolvable:$true] %s263_s27 }
  0x1a   : > { %p2632_p7 = por %p2631_p4, %p2630_p3 }
  0x1b   : > { %p2625_p1 = pnand %p2624_p0, %p2623_p13 }
  0x1d   : > { %p2626_p2 = pneg %p2625_p1 }
  0x1f   : > { %p2633_p8 = pnand %p2632_p7, %p2626_p2 }
  0x21   : > { %2636 = shalt.err (!%p2633_p8)
}
  0x22   : > { %s2758_s26 = smov [#allocation5]   ;;  %s2637_s29 = scalar_lea.vmem %s264_s27, 16 }
  0x23   : > { %2520 = dma.vmem_to_smem (!%p2890_p12), %s275_s24, 16, %s2758_s26, [#allocation6]  }
  0x24   : > { %p2638_p11 = scmp.ne.s32.totalorder %s264_s27, %s2637_s29  ;;  %p2645_p5 = scmp.lt.s32.totalorder %s264_s27, %s264_s27 }
  0x25   : > { %p2646_p10 = scmp.lt.s32.totalorder %s2637_s29, %s2637_s29 }
  0x26   : > { %p2640_p9 = pnand %p2638_p11, %p2624_p0 }
  0x27   : > { %p2647_p13 = por %p2646_p10, %p2645_p5 }
  0x28   : > { %p2641_p6 = pneg %p2640_p9 }
  0x2a   : > { %p2648_p1 = pnand %p2647_p13, %p2641_p6 }
  0x2c   : > { %2651 = shalt.err (!%p2648_p1)
}
  0x2d   : > { %s2759_s14 = smov [#allocation2]   ;;  %s2652_s24 = scalar_lea.vmem %s2897_s16, 16 }
  0x2e   : > { %2517 = dma.vmem_to_smem (!%p2890_p12), %s264_s27, 16, %s2759_s14, [#allocation4]  }
  0x2f   : > { %p2653_p2 = scmp.ne.s32.totalorder %s2897_s16, %s2652_s24  ;;  %p2660_p9 = scmp.lt.s32.totalorder %s2897_s16, %s2897_s16 }
  0x30   : > { %p2661_p7 = scmp.lt.s32.totalorder %s2652_s24, %s2652_s24 }
  0x31   : > { %p2655_p3 = pnand %p2653_p2, %p2624_p0 }
  0x32   : > { %p2662_p5 = por %p2661_p7, %p2660_p9 }
  0x33   : > { %p2656_p4 = pneg %p2655_p3 }
  0x35   : > { %p2663_p6 = pnand %p2662_p5, %p2656_p4 }
  0x37   : > { %2666 = shalt.err (!%p2663_p6)
}
  0x38   : > { %s2760_s17 = smov [#allocation7]   ;;  %s2667_s25 = scalar_lea.vmem %s297_s23, 16 }
  0x39   : > { %2523 = dma.vmem_to_smem (!%p2890_p12), %s2897_s16, 16, %s2760_s17, [#allocation6]  }
  0x3a   : > { %p2668_p10 = scmp.ne.s32.totalorder %s297_s23, %s2667_s25  ;;  %p2675_p13 = scmp.lt.s32.totalorder %s297_s23, %s297_s23 }
  0x3b   : > { %p2676_p1 = scmp.lt.s32.totalorder %s2667_s25, %s2667_s25 }
  0x3c   : > { %p2670_p8 = pnand %p2668_p10, %p2624_p0 }
  0x3d   : > { %p2677_p2 = por %p2676_p1, %p2675_p13 }
  0x3e   : > { %p2671_p11 = pneg %p2670_p8 }
  0x40   : > { %p2678_p3 = pnand %p2677_p2, %p2671_p11 }
  0x42   : > { %2681 = shalt.err (!%p2678_p3)
}
  0x43   : > { %s2761_s26 = smov [#allocation8]   ;;  %p3539_p4 = scmp.ne.s32.totalorder %s3536_s21, 0 }
  0x44   : > { %2526 = dma.vmem_to_smem (!%p2890_p12), %s297_s23, 16, %s2761_s26, [#allocation9]  }
  0x45   : > { %329 = sbr.rel (%p3539_p4) target bundleno = 6031 (0x178f), region = 56  ;;  %p3540_p9 = scmp.eq.s32.totalorder (!%p3539_p4), %s2848_s13, 0 }
  0x4c   : > { %2727 = dma.done.wait (%p3540_p9), [#allocation4], 16   ;;  %p3541_p7 = pmov %p3540_p9 }
  0x4e   : > { %2729 = vsyncadd (%p3541_p7), [#allocation4], 4294967280  ;;  %p3542_p0 = pmov %p3541_p7 }
  0x50   : > { %2731 = dma.done.wait (%p3542_p0), [#allocation6], 32   ;;  %p3543_p5 = pmov %p3542_p0 }
  0x51   : > { %p3544_p6 = pmov %p3542_p0 }
  0x52   : > { %2733 = vsyncadd (%p3543_p5), [#allocation6], 4294967264 }
  0x53   : > { %2735 = dma.done.wait (%p3544_p6), [#allocation9], 16   ;;  %p3545_p12 = pmov %p3542_p0 }
  0x55   : > { %2737 = vsyncadd (%p3545_p12), [#allocation9], 4294967280 }
  0x56   : > { %347 = sfence }
  0x57   : > { %p378_p10 = scmp.lt.s32.totalorder %s2848_s13, 1  ;;  %s2199_s21 = sld [smem:[#allocation2 + $0x4]]  ;;  %vm1127_vm6 = vcmask 1043456   ;;  %vm2765_vm7 = vmmov 1   ;;  %vm2766_vm9 = vmmov 0   ;;  %vm1073_vm15 = vcmask 179200  }
  0x58   : > { %s2196_s28 = sld [smem:[#allocation2 + $0x1]]  ;;  %s2209_s23 = sld [smem:[#allocation2 + $0xd]]  ;;  %vm2473_vm8 = vmpackc.low %vm1127_vm6, %vm2765_vm7  ;;  %vm1304_vm6 = vcmask 122880   ;;  %vm1306_vm7 = vcmask 130048  }
  0x59   : > { %s379_s16 = scalar_select %p378_p10, %s2848_s13, 1 }
  0x5a   : > { %s2197_s29 = sld [smem:[#allocation2 + $0x2]]  ;;  %s2210_s27 = sld [smem:[#allocation2 + $0xe]] }
  0x5b   : > { %s2305_s14 = sshll.u32 %s379_s16, 5  ;;  %s2200_s25 = sld [smem:[#allocation2 + $0x5]] }
  0x5c   : > { %s2952_s22 = scalar_lea.vmem %s3520_s0, %s2305_s14  ;;  %s2212_s26 = sld [smem:[#allocation2 + $0x10]] }
  0x5d   : > { %v2955_v0 = vld [vmem:[%s2952_s22 + $0x8] sm:$0xff]  ;;  %v2958_v1 = vld [vmem:[%s2952_s22] sm:$0xff]  ;;  %v420_v2 = vstv %s2199_s21  ;;  %s2202_s1 = sld [smem:[#allocation2 + $0x7]]  ;;  %s2762_s16 = smov 127   ;;  %v2971_v15 = vld [vmem:[%s2952_s22 + $0x10] sm:$0xff] }
  0x5e   : > { %v400_v3 = vstv %s2196_s28  ;;  %v421_v4 = vmul.f32 %v420_v2, %v2955_v0  ;;  %v487_v6 = vstv %s2209_s23  ;;  %s2203_s21 = sld [smem:[#allocation2 + $0x8]]  ;;  %s2222_s28 = sld [smem:[#allocation2 + $0x19]]  ;;  %v2986_v28 = vld [vmem:[%s2952_s22 + $0x18] sm:$0xff] }
  0x5f   : > { %v401_v5 = vmul.f32 %v400_v3, %v2958_v1  ;;  %v488_v8 = vmul.f32 %v487_v6, %v2958_v1  ;;  %s2763_s14 = smov 126   ;;  %s2223_s23 = sld [smem:[#allocation2 + $0x1a]] }
  0x60   : > { %v408_v7 = vstv %s2197_s29  ;;  %423 = vrot.lane.b32.xlu1 %v421_v4, %s2762_s16  ;;  %v495_v10 = vstv %s2210_s27  ;;  %s2213_s29 = sld [smem:[#allocation2 + $0x11]]  ;;  %s2215_s24 = sld [smem:[#allocation2 + $0x13]] }
  0x61   : > { %403 = vrot.lane.b32.xlu0 %v401_v5, %s2762_s16  ;;  %v409_v9 = vmul.f32 %v408_v7, %v2958_v1  ;;  %v428_v11 = vstv %s2200_s25  ;;  %v496_v12 = vmul.f32 %v495_v10, %v2958_v1  ;;  %s2205_s17 = sld [smem:[#allocation2 + $0xa]]  ;;  %s2225_s27 = sld [smem:[#allocation2 + $0x1c]] }
  0x62   : > { %v429_v13 = vmul.f32 %v428_v11, %v2955_v0  ;;  %v507_v14 = vstv %s2212_s26  ;;  %s2226_s25 = sld [smem:[#allocation2 + $0x1d]]  ;;  %s2216_s26 = sld [smem:[#allocation2 + $0x14]] }
  0x63   : > { %v440_v16 = vstv %s2202_s1  ;;  %v508_v17 = vmul.f32 %v507_v14, %v2955_v0  ;;  %s2206_s1 = sld [smem:[#allocation2 + $0xb]]  ;;  %s2229_s22 = sld [smem:[#allocation2 + $0x20]] }
  0x64   : > { %490 = vrot.lane.b32.xlu1 %v488_v8, %s2762_s16  ;;  %v441_v18 = vmul.f32 %v440_v16, %v2971_v15  ;;  %v448_v19 = vstv %s2203_s21  ;;  %v574_v20 = vstv %s2222_s28  ;;  %s2228_s21 = sld [smem:[#allocation2 + $0x1f]]  ;;  %s2218_s28 = sld [smem:[#allocation2 + $0x16]] }
  0x65   : > { %411 = vrot.lane.b32.xlu0 %v409_v9, %s2763_s14  ;;  %v449_v21 = vmul.f32 %v448_v19, %v2971_v15  ;;  %v575_v22 = vmul.f32 %v574_v20, %v2958_v1  ;;  %v582_v23 = vstv %s2223_s23  ;;  %s2219_s23 = sld [smem:[#allocation2 + $0x17]]  ;;  %p3548_p11 = scmp.ne.s32.totalorder %s3534_s19, 0 }
  0x66   : > { %v515_v24 = vstv %s2213_s29  ;;  %v583_v25 = vmul.f32 %v582_v23, %v2958_v1  ;;  %v527_v27 = vstv %s2215_s24  ;;  %s2231_s29 = sld [smem:[#allocation2 + $0x22]]  ;;  %s2232_s24 = sld [smem:[#allocation2 + $0x23]] }
  0x67   : > { %v516_v26 = vmul.f32 %v515_v24, %v2955_v0  ;;  %v460_v29 = vstv %s2205_s17  ;;  %v528_v30 = vmul.f32 %v527_v27, %v2971_v15  ;;  %v594_v33 = vstv %s2225_s27  ;;  %s395_s17 = sld [smem:[#allocation2]]  ;;  %s2208_s27 = sld [smem:[#allocation2 + $0xc]] }
  0x68   : > { %498 = vrot.lane.b32.xlu1 %v496_v12, %s2763_s14  ;;  %v461_v31 = vmul.f32 %v460_v29, %v2986_v28  ;;  %v595_v35 = vmul.f32 %v594_v33, %v2955_v0  ;;  %v602_v36 = vstv %s2226_s25  ;;  %v535_v37 = vstv %s2216_s26  ;;  %s2207_s25 = sld [smem:[#allocation5 + $0x1]]  ;;  %s2198_s26 = sld [smem:[#allocation2 + $0x3]] }
  0x69   : > { %431 = vrot.lane.b32.xlu0 %v429_v13, %s2763_s14  ;;  %v468_v32 = vstv %s2206_s1  ;;  %v603_v38 = vmul.f32 %v602_v36, %v2955_v0  ;;  %v536_v39 = vmul.f32 %v535_v37, %v2971_v15  ;;  %v622_v44 = vstv %s2229_s22  ;;  %s392_s1 = sld [smem:[#allocation5]] }
  0x6a   : > { %v469_v34 = vmul.f32 %v468_v32, %v2986_v28  ;;  %v614_v40 = vstv %s2228_s21  ;;  %v547_v41 = vstv %s2218_s28  ;;  %v623_v46 = vmul.f32 %v622_v44, %v2971_v15  ;;  %s2211_s21 = sld [smem:[#allocation2 + $0xf]]  ;;  %s2201_s28 = sld [smem:[#allocation2 + $0x6]] }
  0x6b   : > { %v615_v42 = vmul.f32 %v614_v40, %v2971_v15  ;;  %v548_v43 = vmul.f32 %v547_v41, %v2986_v28  ;;  %v555_v45 = vstv %s2219_s23  ;;  %s2221_s22 = sld [smem:[#allocation2 + $0x18]]  ;;  %s2220_s23 = sld [smem:[#allocation5 + $0x2]]  ;;  %v387_v41 = vlaneseq }
  0x6c   : > { %510 = vrot.lane.b32.xlu1 %v508_v17, %s2762_s16  ;;  %v556_v47 = vmul.f32 %v555_v45, %v2986_v28  ;;  %v634_v48 = vstv %s2231_s29  ;;  %v642_v49 = vstv %s2232_s24  ;;  %s2204_s29 = sld [smem:[#allocation2 + $0x9]]  ;;  %s2214_s24 = sld [smem:[#allocation2 + $0x12]] }
  0x6d   : > { %443 = vrot.lane.b32.xlu0 %v441_v18, %s2762_s16  ;;  %v635_v50 = vmul.f32 %v634_v48, %v2986_v28  ;;  %v643_v51 = vmul.f32 %v642_v49, %v2986_v28  ;;  %v396_v52 = vstv %s395_s17  ;;  %v483_v55 = vstv %s2208_s27  ;;  %s2224_s17 = sld [smem:[#allocation2 + $0x1b]]  ;;  %s2217_s27 = sld [smem:[#allocation2 + $0x15]] }
  0x6e   : > { %v397_v53 = vmul.f32 %v396_v52, %v2958_v1  ;;  %v484_v57 = vmul.f32 %v483_v55, %v2958_v1  ;;  %v480_v60 = vstv %s2207_s25  ;;  %v416_v61 = vstv %s2198_s26  ;;  %s3024_s25 = sld [smem:[#allocation7 + $0x1c]]  ;;  %s3026_s26 = sld [smem:[#allocation7 + $0x13]] }
  0x6f   : > { %v393_v54 = vstv %s392_s1  ;;  %v417_v2 = vmul.f32 %v416_v61, %v2955_v0  ;;  %s2227_s1 = sld [smem:[#allocation2 + $0x1e]]  ;;  %v388_v48 = vand.u32 127, %v387_v41 }
  0x70   : > { %451 = vrot.lane.b32.xlu1 %v449_v21, %s2763_s14  ;;  %v398_v56 = vadd.f32 %v397_v53, %v393_v54  ;;  %v485_v63 = vadd.f32 %v484_v57, %v480_v60  ;;  %v503_v5 = vstv %s2211_s21  ;;  %v436_v7 = vstv %s2201_s28  ;;  %s3028_s21 = sld [smem:[#allocation2 + $0x21]]  ;;  %s3030_s28 = sld [smem:[#allocation7 + $0x25]] }
  0x71   : > { %577 = vrot.lane.b32.xlu0 %v575_v22, %s2762_s16  ;;  %v570_v8 = vstv %s2221_s22  ;;  %v504_v11 = vmul.f32 %v503_v5, %v2955_v0  ;;  %v437_v17 = vmul.f32 %v436_v7, %v2971_v15  ;;  %v567_v19 = vstv %s2220_s23  ;;  %s3032_s22 = sld [smem:[#allocation7 + $0xa]]  ;;  %s3042_s23 = sld [smem:[#allocation7 + $0x14]] }
  0x72   : > { %v571_v18 = vmul.f32 %v570_v8, %v2958_v1  ;;  %v456_v24 = vstv %s2204_s29  ;;  %v523_v32 = vstv %s2214_s24  ;;  %vm389_vm0 = vcmp.ge.s32.totalorder %v388_v48, 1  ;;  %s3044_s29 = sld [smem:[#allocation7 + $0x1d]]  ;;  %s2283_s24 = sld [smem:[#allocation7 + $0x2e]] }
  0x73   : > { %v457_v29 = vmul.f32 %v456_v24, %v2986_v28  ;;  %v590_v33 = vstv %s2224_s17  ;;  %v524_v1 = vmul.f32 %v523_v32, %v2971_v15  ;;  %vm390_vm1 = vcmp.le.s32.totalorder %v388_v48, 50  ;;  %s2274_s17 = sld [smem:[#allocation7 + $0x26]] }
  0x74   : > { %585 = vrot.lane.b32.xlu1 %v583_v25, %s2763_s14  ;;  %vm3036_vm2 = vmand %vm389_vm0, %vm390_vm1  ;;  %vm1075_vm0 = vcmask 588800  }
  0x75   : > { %518 = vrot.lane.b32.xlu0 %v516_v26, %s2763_s14  ;;  %v572_v26 = vadd.f32 %v571_v18, %v567_v19  ;;  %v610_v49 = vstv %s2227_s1  ;;  %s2244_s1 = sld [smem:[#allocation7 + $0xb]] }
  0x76   : > { %v611_v54 = vmul.f32 %v610_v49, %v2971_v15  ;;  %v630_v5 = vstv %s3028_s21  ;;  %s2276_s21 = sld [smem:[#allocation7 + $0x28]] }
  0x78   : > { %530 = vrot.lane.b32.xlu1 %v528_v30, %s2762_s16 }
  0x79   : > { %463 = vrot.lane.b32.xlu0 %v461_v31, %s2762_s16 }
  0x7c   : > { %471 = vrot.lane.b32.xlu1 %v469_v34, %s2763_s14 }
  0x7d   : > { %597 = vrot.lane.b32.xlu0 %v595_v35, %s2762_s16 }
  0x80   : > { %605 = vrot.lane.b32.xlu1 %v603_v38, %s2763_s14  ;;  %v591_v38 = vmul.f32 %v590_v33, %v2955_v0 }
  0x81   : > { %538 = vrot.lane.b32.xlu0 %v536_v39, %s2763_s14 }
  0x84   : > { %617 = vrot.lane.b32.xlu1 %v615_v42, %s2762_s16 }
  0x85   : > { %550 = vrot.lane.b32.xlu0 %v548_v43, %s2762_s16 }
  0x88   : > { %625 = vrot.lane.b32.xlu1 %v623_v46, %s2763_s14 }
  0x89   : > { %558 = vrot.lane.b32.xlu0 %v556_v47, %s2763_s14 }
  0x8c   : > { %645 = vrot.lane.b32.xlu1 %v643_v51, %s2763_s14 }
  0x8d   : > { %637 = vrot.lane.b32.xlu0 %v635_v50, %s2762_s16  ;;  %v543_v50 = vstv %s2217_s27  ;;  %s2284_s27 = sld [smem:[#allocation7 + $0x2f]] }
  0x8e   : > { %v544_v55 = vmul.f32 %v543_v50, %v2986_v28 }
  0xd2   : > { %v424_v58 = vpop.permute.xlu1 %423 }
  0xd3   : > { %v404_v59 = vpop.permute.xlu0 %403 }
  0xd4   : > { %v406_v62 = vadd.f32 %v404_v59, %v398_v56 }
  0xd6   : > { %v491_v3 = vpop.permute.xlu1 %490 }
  0xd7   : > { %v412_v4 = vpop.permute.xlu0 %411  ;;  %v493_v9 = vadd.f32 %v491_v3, %v485_v63  ;;  %v793_v63 = vstv %s3026_s26  ;;  %s2266_s26 = sld [smem:[#allocation7 + $0x1f]] }
  0xd8   : > { %v414_v6 = vadd.f32 %v412_v4, %v406_v62  ;;  %v859_v62 = vstv %s3024_s25  ;;  %s2256_s25 = sld [smem:[#allocation7 + $0x16]] }
  0xda   : > { %v418_v10 = vadd.f32 %v417_v2, %v414_v6  ;;  %v499_v12 = vpop.permute.xlu1 %498 }
  0xdb   : > { %v432_v13 = vpop.permute.xlu0 %431  ;;  %v501_v14 = vadd.f32 %v499_v12, %v493_v9  ;;  %v925_v12 = vstv %s3030_s28  ;;  %s2246_s28 = sld [smem:[#allocation7 + $0xd]] }
  0xdc   : > { %v426_v16 = vadd.f32 %v424_v58, %v418_v10 }
  0xdd   : > { %v505_v21 = vadd.f32 %v504_v11, %v501_v14  ;;  %v631_v14 = vmul.f32 %v630_v5, %v2986_v28 }
  0xde   : > { %v434_v20 = vadd.f32 %v432_v13, %v426_v16  ;;  %v511_v22 = vpop.permute.xlu1 %510  ;;  %v727_v13 = vstv %s3032_s22  ;;  %s2257_s22 = sld [smem:[#allocation7 + $0x17]] }
  0xdf   : > { %v444_v23 = vpop.permute.xlu0 %443  ;;  %v513_v36 = vadd.f32 %v511_v22, %v505_v21  ;;  %v801_v22 = vstv %s3042_s23  ;;  %s2267_s23 = sld [smem:[#allocation7 + $0x20]] }
  0xe0   : > { %v438_v25 = vadd.f32 %v437_v17, %v434_v20 }
  0xe2   : > { %v446_v27 = vadd.f32 %v444_v23, %v438_v25  ;;  %v452_v30 = vpop.permute.xlu1 %451  ;;  %v867_v23 = vstv %s3044_s29  ;;  %s2286_s29 = sld [smem:[#allocation7 + $0x31]] }
  0xe3   : > { %v578_v31 = vpop.permute.xlu0 %577 }
  0xe4   : > { %v454_v34 = vadd.f32 %v452_v30, %v446_v27  ;;  %v580_v35 = vadd.f32 %v578_v31, %v572_v26  ;;  %v933_v30 = vstv %s2274_s17  ;;  %v821_v50 = vstv %s2257_s22  ;;  %s2247_s17 = sld [smem:[#allocation7 + $0xe]]  ;;  %s2270_s22 = sld [smem:[#allocation7 + $0x23]] }
  0xe6   : > { %v458_v37 = vadd.f32 %v457_v29, %v454_v34  ;;  %v586_v39 = vpop.permute.xlu1 %585  ;;  %v991_v29 = vstv %s2283_s24  ;;  %v735_v34 = vstv %s2244_s1  ;;  %s2277_s24 = sld [smem:[#allocation7 + $0x29]]  ;;  %s2287_s1 = sld [smem:[#allocation7 + $0x32]] }
  0xe7   : > { %v519_v40 = vpop.permute.xlu0 %518  ;;  %v588_v42 = vadd.f32 %v586_v39, %v580_v35  ;;  %v999_v35 = vstv %s2284_s27  ;;  %v813_v39 = vstv %s2256_s25  ;;  %s2259_s27 = sld [smem:[#allocation7 + $0x19]]  ;;  %s2269_s25 = sld [smem:[#allocation7 + $0x22]] }
  0xe8   : > { %v521_v43 = vadd.f32 %v519_v40, %v513_v36  ;;  %v879_v40 = vstv %s2266_s26  ;;  %s2279_s26 = sld [smem:[#allocation7 + $0x2b]] }
  0xe9   : > { %v592_v45 = vadd.f32 %v591_v38, %v588_v42 }
  0xea   : > { %v525_v44 = vadd.f32 %v524_v1, %v521_v43  ;;  %v531_v46 = vpop.permute.xlu1 %530 }
  0xeb   : > { %v464_v47 = vpop.permute.xlu0 %463 }
  0xec   : > { %v466_v0 = vadd.f32 %v464_v47, %v458_v37  ;;  %v533_v56 = vadd.f32 %v531_v46, %v525_v44  ;;  %v747_v46 = vstv %s2246_s28  ;;  %s2260_s28 = sld [smem:[#allocation7 + $0x1a]] }
  0xed   : > { %v833_v5 = vstv %s2259_s27  ;;  %s2233_s27 = sld [smem:[#allocation7 + $0x1]] }
  0xee   : > { %v472_v51 = vpop.permute.xlu1 %471 }
  0xef   : > { %v598_v52 = vpop.permute.xlu0 %597  ;;  %v474_v53 = vadd.f32 %v472_v51, %v466_v0  ;;  %v887_v51 = vstv %s2267_s23  ;;  %s2289_s23 = sld [smem:[#allocation7 + $0x34]] }
  0xf0   : > { %v600_v59 = vadd.f32 %v598_v52, %v592_v45  ;;  %v945_v45 = vstv %s2276_s21  ;;  %s2249_s21 = sld [smem:[#allocation7 + $0x10]] }
  0xf1   : > { %vm475_vm3 = vcmp.gt.f32.partialorder %v474_v53, 0.0  ;;  %v476_v58 = vmul.f32 0.01, %v474_v53 }
  0xf2   : > { %v606_v60 = vpop.permute.xlu1 %605 }
  0xf3   : > { %v539_v61 = vpop.permute.xlu0 %538  ;;  %v477_v15 = vsel %vm475_vm3, %v474_v53, %v476_v58  ;;  %v608_v2 = vadd.f32 %v606_v60, %v600_v59  ;;  %vm1124_vm3 = vcmask 359424  }
  0xf4   : > { %v541_v3 = vadd.f32 %v539_v61, %v533_v56  ;;  %v3048_v4 = vsel %vm3036_vm2, %v477_v15, 0.0  ;;  %v953_v56 = vstv %s2277_s24  ;;  %v755_v61 = vstv %s2247_s17  ;;  %s2250_s24 = sld [smem:[#allocation7 + $0x11]]  ;;  %s2290_s17 = sld [smem:[#allocation7 + $0x35]] }
  0xf5   : > { %v612_v6 = vadd.f32 %v611_v54, %v608_v2  ;;  %v860_v8 = vmul.f32 %v859_v62, %v3048_v4  ;;  %v794_v9 = vmul.f32 %v793_v63, %v3048_v4  ;;  %v926_v18 = vmul.f32 %v925_v12, %v3048_v4 }
  0xf6   : > { %v545_v7 = vadd.f32 %v544_v55, %v541_v3  ;;  %v618_v10 = vpop.permute.xlu1 %617  ;;  %v728_v19 = vmul.f32 %v727_v13, %v3048_v4  ;;  %v802_v28 = vmul.f32 %v801_v22, %v3048_v4  ;;  %v868_v27 = vmul.f32 %v867_v23, %v3048_v4 }
  0xf7   : > { %v551_v11 = vpop.permute.xlu0 %550  ;;  %862 = vrot.lane.b32.xlu1 %v860_v8, %s2762_s16  ;;  %796 = vrot.lane.b32.xlu0 %v794_v9, %s2762_s16  ;;  %v620_v16 = vadd.f32 %v618_v10, %v612_v6  ;;  %v992_v32 = vmul.f32 %v991_v29, %v3048_v4  ;;  %v934_v33 = vmul.f32 %v933_v30, %v3048_v4  ;;  %v1011_v55 = vstv %s2286_s29  ;;  %s2280_s29 = sld [smem:[#allocation7 + $0x2c]] }
  0xf8   : > { %v553_v17 = vadd.f32 %v551_v11, %v545_v7  ;;  %v736_v1 = vmul.f32 %v735_v34, %v3048_v4  ;;  %v1000_v37 = vmul.f32 %v999_v35, %v3048_v4  ;;  %v1019_v62 = vstv %s2287_s1  ;;  %s2234_s1 = sld [smem:[#allocation7 + $0x2]]  ;;  %v1095_v35 = vld [vmem:[%s3525_s5 + $0x80] sm:$0xff] }
  0xf9   : > { %v899_v6 = vstv %s2269_s25  ;;  %v965_v9 = vstv %s2279_s26  ;;  %v767_v10 = vstv %s2249_s21  ;;  %v841_v12 = vstv %s2260_s28  ;;  %s2237_s25 = sld [smem:[#allocation7 + $0x5]]  ;;  %s2236_s26 = sld [smem:[#allocation7 + $0x4]] }
  0xfa   : > { %v626_v20 = vpop.permute.xlu1 %625  ;;  %v907_v13 = vstv %s2270_s22  ;;  %v1039_v22 = vstv %s2290_s17  ;;  %s2240_s21 = sld [smem:[#allocation7 + $0x8]]  ;;  %s2239_s28 = sld [smem:[#allocation7 + $0x7]] }
  0xfb   : > { %v559_v21 = vpop.permute.xlu0 %558  ;;  %v628_v24 = vadd.f32 %v626_v20, %v620_v16  ;;  %928 = vrot.lane.b32.xlu0 %v926_v18, %s2762_s16  ;;  %730 = vrot.lane.b32.xlu1 %v728_v19, %s2762_s16  ;;  %s2262_s17 = sld [smem:[#allocation7 + $0x1b]]  ;;  %s3224_s22 = sld [smem:[#allocation7 + $0x1e]] }
  0xfc   : > { %v561_v25 = vadd.f32 %v559_v21, %v553_v17  ;;  %v1031_v17 = vstv %s2289_s23  ;;  %v775_v21 = vstv %s2250_s24  ;;  %s3228_s23 = sld [smem:[#allocation8 + $0x1]]  ;;  %s3232_s24 = sld [smem:[#allocation7 + $0x27]] }
  0xfd   : > { %v632_v26 = vadd.f32 %v631_v14, %v628_v24  ;;  %v973_v18 = vstv %s2280_s29  ;;  %s3230_s29 = sld [smem:[#allocation8 + $0x5]] }
  0xfe   : > { %v563_v31 = vmul.f32 0.01, %v561_v25  ;;  %vm562_vm4 = vcmp.gt.f32.partialorder %v561_v25, 0.0  ;;  %v646_v48 = vpop.permute.xlu1 %645 }
  0xff   : > { %804 = vrot.lane.b32.xlu0 %v802_v28, %s2763_s14  ;;  %870 = vrot.lane.b32.xlu1 %v868_v27, %s2763_s14  ;;  %v638_v42 = vpop.permute.xlu0 %637  ;;  %v689_v29 = vstv %s2237_s25  ;;  %v681_v30 = vstv %s2236_s26  ;;  %s3216_s25 = sld [smem:[#allocation8 + $0x4]]  ;;  %s3218_s26 = sld [smem:[#allocation7 + $0x9]] }
 0x100   : > { %v564_v36 = vsel %vm562_vm4, %v561_v25, %v563_v31  ;;  %v640_v47 = vadd.f32 %v638_v42, %v632_v26  ;;  %v669_v25 = vstv %s2234_s1  ;;  %v661_v26 = vstv %s2233_s27  ;;  %s2252_s1 = sld [smem:[#allocation7 + $0x12]] }
 0x101   : > { %v3076_v38 = vsel %vm3036_vm2, %v564_v36, 0.0  ;;  %v670_v28 = vmul.f32 %v669_v25, %v3048_v4  ;;  %v662_v27 = vmul.f32 %v661_v26, %v3048_v4  ;;  %v701_v34 = vstv %s2239_s28  ;;  %v1096_v36 = vld [vmem:[%s3525_s5 + $0x88] sm:$0xff]  ;;  %s2251_s27 = sld [smem:[#allocation8 + $0x2]]  ;;  %s3222_s28 = sld [smem:[#allocation7 + $0x15]] }
 0x102   : > { %v814_v43 = vmul.f32 %v813_v39, %v3076_v38  ;;  %v880_v44 = vmul.f32 %v879_v40, %v3076_v38  ;;  %v946_v0 = vmul.f32 %v945_v45, %v3076_v38  ;;  %v748_v49 = vmul.f32 %v747_v46, %v3076_v38  ;;  %v1080_v39 = vld [vmem:[%s3525_s5 + $0x8] sm:$0xff]  ;;  %v1097_v40 = vld [vmem:[%s3525_s5 + $0x90] sm:$0xff]  ;;  %v1082_v45 = vld [vmem:[%s3525_s5 + $0x18] sm:$0xff] }
 0x103   : > { %994 = vrot.lane.b32.xlu0 %v992_v32, %s2762_s16  ;;  %936 = vrot.lane.b32.xlu1 %v934_v33, %s2763_s14  ;;  %v648_v52 = vadd.f32 %v646_v48, %v640_v47  ;;  %v822_v53 = vmul.f32 %v821_v50, %v3076_v38  ;;  %v888_v54 = vmul.f32 %v887_v51, %v3076_v38  ;;  %v709_v33 = vstv %s2240_s21  ;;  %v1100_v50 = vld [vmem:[%s3525_s5 + $0xa8] sm:$0xff]  ;;  %s3220_s21 = sld [smem:[#allocation7 + $0x2d]] }
 0x104   : > { %v1012_v59 = vmul.f32 %v1011_v55, %v3076_v38  ;;  %v954_v60 = vmul.f32 %v953_v56, %v3076_v38  ;;  %v756_v15 = vmul.f32 %v755_v61, %v3076_v38  ;;  %v1020_v2 = vmul.f32 %v1019_v62, %v3076_v38  ;;  %v1101_v55 = vld [vmem:[%s3525_s5 + $0xb0] sm:$0xff]  ;;  %v1102_v56 = vld [vmem:[%s3525_s5 + $0xb8] sm:$0xff] }
 0x105   : > { %v650_v58 = vmul.f32 0.01, %v648_v52  ;;  %vm649_vm5 = vcmp.gt.f32.partialorder %v648_v52, 0.0  ;;  %v690_v31 = vmul.f32 %v689_v29, %v3076_v38  ;;  %v682_v32 = vmul.f32 %v681_v30, %v3076_v38 }
 0x106   : > { %v2764_v46 = vmov 0.0|0.0   ;;  %v2445_v62 = vpack.c.bf16 %v1102_v56, %v1101_v55  ;;  %v918_v26 = vstv %s3216_s25  ;;  %s2248_s25 = sld [smem:[#allocation7 + $0xf]]  ;;  %vm1077_vm4 = vcmask 998400  }
 0x107   : > { %738 = vrot.lane.b32.xlu0 %v736_v1, %s2763_s14  ;;  %1002 = vrot.lane.b32.xlu1 %v1000_v37, %s2763_s14  ;;  %v651_v63 = vsel %vm649_vm5, %v648_v52, %v650_v58  ;;  %v1079_v1 = vld [vmem:[%s3525_s5] sm:$0xff]  ;;  %v2433_v37 = vpack.c.bf16 %v1096_v36, %v1095_v35  ;;  %v786_v25 = vstv %s2251_s27  ;;  %s2278_s27 = sld [smem:[#allocation7 + $0x2a]]  ;;  %vm1071_vm5 = vcmask 818176  }
 0x108   : > { %v3100_v3 = vsel %vm3036_vm2, %v651_v63, 0.0  ;;  %v2435_v42 = vpack.c.bf16 %v1080_v39, %v1079_v1  ;;  %2465 = vmatprep.subr.bf16.mxu1 %v2764_v46  ;;  %v1111_v58 = vld [vmem:[%s3525_s5 + $0x100] sm:$0xff]  ;;  %v1085_v63 = vld [vmem:[%s3525_s5 + $0x30] sm:$0xff]  ;;  %v875_v35 = vstv %s3224_s22  ;;  %s2768_s22 = smov 22   ;;  %vm1069_vm2 = vcmask 408576  }
 0x109   : > { %v834_v7 = vmul.f32 %v833_v5, %v3100_v3  ;;  %v900_v8 = vmul.f32 %v899_v6, %v3100_v3  ;;  %v966_v57 = vmul.f32 %v965_v9, %v3100_v3  ;;  %v768_v11 = vmul.f32 %v767_v10, %v3100_v3  ;;  %2434 = vmatprep.subr.bf16.mxu0 %v2433_v37  ;;  %v1104_v5 = vld [vmem:[%s3525_s5 + $0xc8] sm:$0xff]  ;;  %v1105_v10 = vld [vmem:[%s3525_s5 + $0xd0] sm:$0xff] }
 0x10a   : > { %v842_v14 = vmul.f32 %v841_v12, %v3100_v3  ;;  %v908_v16 = vmul.f32 %v907_v13, %v3100_v3  ;;  %v1032_v19 = vmul.f32 %v1031_v17, %v3100_v3  ;;  %v974_v20 = vmul.f32 %v973_v18, %v3100_v3  ;;  %2436 = vmatpush3.bf16.msra.mxu0 %v2435_v42  ;;  %v1088_v9 = vld [vmem:[%s3525_s5 + $0x48] sm:$0xff]  ;;  %v1089_v13 = vld [vmem:[%s3525_s5 + $0x50] sm:$0xff] }
 0x10b   : > { %816 = vrot.lane.b32.xlu0 %v814_v43, %s2762_s16  ;;  %882 = vrot.lane.b32.xlu1 %v880_v44, %s2762_s16  ;;  %v776_v23 = vmul.f32 %v775_v21, %v3100_v3  ;;  %v1040_v24 = vmul.f32 %v1039_v22, %v3100_v3  ;;  %v1098_v43 = vld [vmem:[%s3525_s5 + $0x98] sm:$0xff]  ;;  %v1081_v44 = vld [vmem:[%s3525_s5 + $0x10] sm:$0xff]  ;;  %v710_v47 = vmul.f32 %v709_v33, %v3100_v3 }
 0x10c   : > { %v702_v48 = vmul.f32 %v701_v34, %v3100_v3  ;;  %v2439_v51 = vpack.c.bf16 %v1082_v45, %v1081_v44  ;;  %v855_v17 = vstv %s2262_s17  ;;  %v789_v18 = vstv %s2252_s1  ;;  %s3240_s17 = sld [smem:[#allocation7 + $0xc]]  ;;  %s3242_s1 = sld [smem:[#allocation7 + $0x30]] }
 0x10d   : > { %v856_v21 = vmul.f32 %v855_v17, %v3048_v4  ;;  %v790_v22 = vmul.f32 %v789_v18, %v3048_v4  ;;  %v987_v33 = vstv %s3220_s21  ;;  %v809_v34 = vstv %s3222_s28  ;;  %s3311_s28 = sld [smem:[#allocation7 + $0x3]]  ;;  %s2774_s21 = smov 32  }
 0x10f   : > { %948 = vrot.lane.b32.xlu0 %v946_v0, %s2762_s16  ;;  %750 = vrot.lane.b32.xlu1 %v748_v49, %s2762_s16  ;;  %v2437_v0 = vpack.c.bf16 %v1098_v43, %v1097_v40  ;;  %v1099_v49 = vld [vmem:[%s3525_s5 + $0xa0] sm:$0xff]  ;;  %v988_v43 = vmul.f32 %v987_v33, %v3048_v4 }
 0x110   : > { %v2441_v52 = vpack.c.bf16 %v1100_v50, %v1099_v49  ;;  %v984_v49 = vstv %s3230_s29  ;;  %v941_v50 = vstv %s3232_s24  ;;  %s2770_s29 = smov 72   ;;  %s375_s24 = sand.u32 1, %s2748_s10  }
 0x111   : > { %2438 = vmatprep.subr.bf16.mxu0 %v2437_v0  ;;  %v720_v0 = vstv %s3228_s23  ;;  %s2769_s23 = smov 100  }
 0x112   : > { %2440 = vmatpush3.bf16.msra.mxu0 %v2439_v51 }
 0x113   : > { %824 = vrot.lane.b32.xlu0 %v822_v53, %s2763_s14  ;;  %890 = vrot.lane.b32.xlu1 %v888_v54, %s2763_s14  ;;  %v1083_v53 = vld [vmem:[%s3525_s5 + $0x20] sm:$0xff]  ;;  %v1084_v54 = vld [vmem:[%s3525_s5 + $0x28] sm:$0xff] }
 0x114   : > { %2442 = vmatprep.subr.bf16.mxu0 %v2441_v52 }
 0x117   : > { %1014 = vrot.lane.b32.xlu0 %v1012_v59, %s2762_s16  ;;  %956 = vrot.lane.b32.xlu1 %v954_v60, %s2763_s14  ;;  %v1112_v59 = vld [vmem:[%s3525_s5 + $0x108] sm:$0xff]  ;;  %v2443_v60 = vpack.c.bf16 %v1084_v54, %v1083_v53 }
 0x118   : > { %v2466_v61 = vpack.c.bf16 %v1112_v59, %v1111_v58  ;;  %v989_v58 = vadd.f32 %v988_v43, %v984_v49 }
 0x119   : > { %2444 = vmatpush3.bf16.msra.mxu0 %v2443_v60  ;;  %v942_v60 = vmul.f32 %v941_v50, %v3076_v38 }
 0x11a   : > { %2467 = vmatpush3.bf16.msra.mxu1 %v2466_v61  ;;  %2446 = vmatprep.subr.bf16.mxu0 %v2445_v62  ;;  %v743_v61 = vstv %s3240_s17  ;;  %v1007_v62 = vstv %s3242_s1  ;;  %s3274_s17 = sld [smem:[#allocation7]] }
 0x11b   : > { %758 = vrot.lane.b32.xlu0 %v756_v15, %s2763_s14  ;;  %1022 = vrot.lane.b32.xlu1 %v1020_v2, %s2763_s14  ;;  %v1086_v15 = vld [vmem:[%s3525_s5 + $0x38] sm:$0xff]  ;;  %v1103_v2 = vld [vmem:[%s3525_s5 + $0xc0] sm:$0xff]  ;;  %s3295_s1 = sld [smem:[#allocation8]] }
 0x11c   : > { %2468 = vmatprep.subr.bf16.mxu1 %v2764_v46  ;;  %v2447_v6 = vpack.c.bf16 %v1086_v15, %v1085_v63 }
 0x11e   : > { %2448 = vmatpush3.bf16.msra.mxu0 %v2447_v6 }
 0x11f   : > { %836 = vrot.lane.b32.xlu0 %v834_v7, %s2762_s16  ;;  %902 = vrot.lane.b32.xlu1 %v900_v8, %s2762_s16  ;;  %v2449_v7 = vpack.c.bf16 %v1104_v5, %v1103_v2  ;;  %v1087_v8 = vld [vmem:[%s3525_s5 + $0x40] sm:$0xff] }
 0x121   : > { %2450 = vmatprep.subr.bf16.mxu0 %v2449_v7 }
 0x123   : > { %968 = vrot.lane.b32.xlu0 %v966_v57, %s2762_s16  ;;  %770 = vrot.lane.b32.xlu1 %v768_v11, %s2762_s16  ;;  %v1106_v57 = vld [vmem:[%s3525_s5 + $0xd8] sm:$0xff]  ;;  %v2451_v11 = vpack.c.bf16 %v1088_v9, %v1087_v8  ;;  %v744_v9 = vmul.f32 %v743_v61, %v3076_v38 }
 0x124   : > { %v2453_v12 = vpack.c.bf16 %v1106_v57, %v1105_v10  ;;  %v1008_v10 = vmul.f32 %v1007_v62, %v3076_v38 }
 0x125   : > { %2452 = vmatpush3.bf16.msra.mxu0 %v2451_v11 }
 0x126   : > { %2454 = vmatprep.subr.bf16.mxu0 %v2453_v12 }
 0x127   : > { %844 = vrot.lane.b32.xlu0 %v842_v14, %s2763_s14  ;;  %910 = vrot.lane.b32.xlu1 %v908_v16, %s2763_s14  ;;  %v1090_v14 = vld [vmem:[%s3525_s5 + $0x58] sm:$0xff] }
 0x128   : > { %v2455_v16 = vpack.c.bf16 %v1090_v14, %v1089_v13 }
 0x12a   : > { %2456 = vmatpush3.bf16.msra.mxu0 %v2455_v16 }
 0x12b   : > { %1034 = vrot.lane.b32.xlu0 %v1032_v19, %s2762_s16  ;;  %976 = vrot.lane.b32.xlu1 %v974_v20, %s2763_s14 }
 0x12f   : > { %778 = vrot.lane.b32.xlu0 %v776_v23, %s2763_s14  ;;  %1042 = vrot.lane.b32.xlu1 %v1040_v24, %s2763_s14 }
 0x133   : > { %672 = vrot.lane.b32.xlu1 %v670_v28, %s2763_s14  ;;  %664 = vrot.lane.b32.xlu0 %v662_v27, %s2762_s16 }
 0x137   : > { %692 = vrot.lane.b32.xlu1 %v690_v31, %s2763_s14  ;;  %684 = vrot.lane.b32.xlu0 %v682_v32, %s2762_s16  ;;  %v791_v31 = vadd.f32 %v790_v22, %v786_v25  ;;  %v723_v32 = vstv %s3218_s26  ;;  %s2288_s26 = sld [smem:[#allocation7 + $0x33]] }
 0x138   : > { %v724_v39 = vmul.f32 %v723_v32, %v3048_v4 }
 0x13a   : > { %v725_v56 = vadd.f32 %v724_v39, %v720_v0 }
 0x13b   : > { %712 = vrot.lane.b32.xlu1 %v710_v47, %s2763_s14  ;;  %704 = vrot.lane.b32.xlu0 %v702_v48, %s2762_s16  ;;  %s2272_s14 = sld [smem:[#allocation7 + $0x24]]  ;;  %s2261_s16 = sld [smem:[#allocation8 + $0x3]]  ;;  %v810_v47 = vmul.f32 %v809_v34, %v3076_v38  ;;  %v876_v48 = vmul.f32 %v875_v35, %v3076_v38  ;;  %v763_v35 = vstv %s2248_s25 }
 0x141   : > { %v921_v23 = vstv %s2272_s14  ;;  %v852_v24 = vstv %s2261_s16  ;;  %s2258_s14 = sld [smem:[#allocation7 + $0x18]]  ;;  %s2268_s16 = sld [smem:[#allocation7 + $0x21]] }
 0x142   : > { %v922_v28 = vmul.f32 %v921_v23, %v3048_v4  ;;  %v857_v30 = vadd.f32 %v856_v21, %v852_v24 }
 0x144   : > { %v923_v37 = vadd.f32 %v922_v28, %v918_v26  ;;  %v961_v28 = vstv %s2278_s27  ;;  %s2773_s27 = smov 96  }
 0x145   : > { %v962_v34 = vmul.f32 %v961_v28, %v3100_v3  ;;  %v654_v28 = vstv %s3295_s1  ;;  %s2193_s1 = sshll.u32 %s375_s24, 3 }
 0x147   : > { %v829_v17 = vstv %s2258_s14  ;;  %v895_v18 = vstv %s2268_s16  ;;  %s2771_s14 = smov 50   ;;  %s2772_s16 = smov 122  }
 0x148   : > { %v830_v25 = vmul.f32 %v829_v17, %v3100_v3  ;;  %v896_v26 = vmul.f32 %v895_v18, %v3100_v3 }
 0x169   : > { %v863_v19 = vpop.permute.xlu1 %862  ;;  %v797_v20 = vpop.permute.xlu0 %796 }
 0x16a   : > { %v865_v36 = vadd.f32 %v863_v19, %v857_v30  ;;  %v799_v1 = vadd.f32 %v797_v20, %v791_v31 }
 0x16d   : > { %v929_v27 = vpop.permute.xlu0 %928  ;;  %v731_v29 = vpop.permute.xlu1 %730 }
 0x16e   : > { %v931_v51 = vadd.f32 %v929_v27, %v923_v37  ;;  %v733_v63 = vadd.f32 %v731_v29, %v725_v56  ;;  %v1091_v56 = vld [vmem:[%s3525_s5 + $0x60] sm:$0xff] }
 0x171   : > { %v805_v40 = vpop.permute.xlu0 %804  ;;  %v871_v42 = vpop.permute.xlu1 %870 }
 0x172   : > { %v807_v44 = vadd.f32 %v805_v40, %v799_v1  ;;  %v873_v45 = vadd.f32 %v871_v42, %v865_v36  ;;  %v1027_v36 = vstv %s2288_s26 }
 0x174   : > { %v811_v52 = vadd.f32 %v810_v47, %v807_v44  ;;  %v877_v53 = vadd.f32 %v876_v48, %v873_v45  ;;  %v764_v45 = vmul.f32 %v763_v35, %v3100_v3  ;;  %v1028_v47 = vmul.f32 %v1027_v36, %v3100_v3 }
 0x175   : > { %v995_v54 = vpop.permute.xlu0 %994  ;;  %v937_v55 = vpop.permute.xlu1 %936 }
 0x176   : > { %v939_v59 = vadd.f32 %v937_v55, %v931_v51  ;;  %v997_v15 = vadd.f32 %v995_v54, %v989_v58  ;;  %v1113_v51 = vld [vmem:[%s3525_s5 + $0x110] sm:$0xff]  ;;  %v1108_v55 = vld [vmem:[%s3525_s5 + $0xe8] sm:$0xff] }
 0x177   : > { %v1092_v58 = vld [vmem:[%s3525_s5 + $0x68] sm:$0xff] }
 0x178   : > { %v943_v2 = vadd.f32 %v942_v60, %v939_v59  ;;  %v2459_v60 = vpack.c.bf16 %v1092_v58, %v1091_v56 }
 0x179   : > { %v739_v5 = vpop.permute.xlu0 %738  ;;  %v1003_v6 = vpop.permute.xlu1 %1002 }
 0x17a   : > { %v741_v7 = vadd.f32 %v739_v5, %v733_v63  ;;  %v1005_v8 = vadd.f32 %v1003_v6, %v997_v15  ;;  %v1115_v63 = vld [vmem:[%s3525_s5 + $0x120] sm:$0xff]  ;;  %v1116_v15 = vld [vmem:[%s3525_s5 + $0x128] sm:$0xf]  ;;  %v1110_v6 = vld [vmem:[%s3525_s5 + $0xf8] sm:$0xff] }
 0x17b   : > { %v2472_v5 = vpack.c.bf16 %v1116_v15, %v1115_v63 }
 0x17c   : > { %v745_v57 = vadd.f32 %v744_v9, %v741_v7  ;;  %v1009_v11 = vadd.f32 %v1008_v10, %v1005_v8  ;;  %v1093_v7 = vld [vmem:[%s3525_s5 + $0x70] sm:$0xff] }
 0x17d   : > { %v817_v12 = vpop.permute.xlu0 %816  ;;  %v883_v13 = vpop.permute.xlu1 %882 }
 0x17e   : > { %v819_v19 = vadd.f32 %v817_v12, %v811_v52  ;;  %v885_v20 = vadd.f32 %v883_v13, %v877_v53  ;;  %v1114_v52 = vld [vmem:[%s3525_s5 + $0x118] sm:$0xff]  ;;  %v1107_v53 = vld [vmem:[%s3525_s5 + $0xe0] sm:$0xff] }
 0x17f   : > { %v2469_v54 = vpack.c.bf16 %v1114_v52, %v1113_v51  ;;  %v2457_v59 = vpack.c.bf16 %v1108_v55, %v1107_v53 }
 0x181   : > { %v949_v14 = vpop.permute.xlu0 %948  ;;  %v751_v16 = vpop.permute.xlu1 %750  ;;  %2470 = vmatpush3.bf16.msra.mxu1 %v2469_v54  ;;  %2458 = vmatprep.subr.bf16.mxu0 %v2457_v59 }
 0x182   : > { %v951_v27 = vadd.f32 %v949_v14, %v943_v2  ;;  %v753_v1 = vadd.f32 %v751_v16, %v745_v57  ;;  %2471 = vmatprep.subr.bf16.mxu1 %v2764_v46  ;;  %v1109_v2 = vld [vmem:[%s3525_s5 + $0xf0] sm:$0xff]  ;;  %2460 = vmatpush3.bf16.msra.mxu0 %v2459_v60  ;;  %v1094_v57 = vld [vmem:[%s3525_s5 + $0x78] sm:$0xff] }
 0x183   : > { %v2461_v10 = vpack.c.bf16 %v1110_v6, %v1109_v2  ;;  %v2463_v14 = vpack.c.bf16 %v1094_v57, %v1093_v7 }
 0x185   : > { %v825_v21 = vpop.permute.xlu0 %824  ;;  %v891_v22 = vpop.permute.xlu1 %890  ;;  %2474 = vmatpush3.bf16.msk.msra.mxu1 %vm2473_vm8, %v2472_v5  ;;  %2462 = vmatprep.subr.bf16.mxu0 %v2461_v10  ;;  %vm1411_vm8 = vcmask 123905  }
 0x186   : > { %v827_v23 = vadd.f32 %v825_v21, %v819_v19  ;;  %v893_v24 = vadd.f32 %v891_v22, %v885_v20  ;;  %2475 = vmatprep.subr.bf16.mxu1 %v2764_v46  ;;  %v657_v19 = vstv %s3274_s17  ;;  %2464 = vmatpush3.bf16.msra.mxu0 %v2463_v14  ;;  %s3318_s17 = sld [smem:[#allocation7 + $0x6]] }
 0x187   : > { %2490 = vmatprep.subr.bf16.mxu0 %v2764_v46 }
 0x188   : > { %v831_v29 = vadd.f32 %v830_v25, %v827_v23  ;;  %v897_v30 = vadd.f32 %v896_v26, %v893_v24 }
 0x189   : > { %v1015_v31 = vpop.permute.xlu0 %1014  ;;  %v957_v32 = vpop.permute.xlu1 %956 }
 0x18a   : > { %v959_v33 = vadd.f32 %v957_v32, %v951_v27  ;;  %v1017_v37 = vadd.f32 %v1015_v31, %v1009_v11  ;;  %v2767_v11 = vmov 0.0   ;;  %v658_v27 = vmul.f32 %v657_v19, %v3048_v4 }
 0x18b   : > { %2381 = vmatprep.mubr.msk.f32.mxu1 %vm2766_vm9, %v2767_v11 }
 0x18c   : > { %v963_v39 = vadd.f32 %v962_v34, %v959_v33  ;;  %v697_v53 = vstv %s3318_s17 }
 0x18d   : > { %v759_v40 = vpop.permute.xlu0 %758  ;;  %v1023_v42 = vpop.permute.xlu1 %1022  ;;  %v698_v58 = vmul.f32 %v697_v53, %v3100_v3 }
 0x18e   : > { %v761_v43 = vadd.f32 %v759_v40, %v753_v1  ;;  %v1025_v44 = vadd.f32 %v1023_v42, %v1017_v37  ;;  %v659_v37 = vadd.f32 %v658_v27, %v654_v28 }
 0x190   : > { %v3261_v48 = vadd.f32 %v764_v45, %v761_v43  ;;  %v3263_v0 = vadd.f32 %v1028_v47, %v1025_v44  ;;  %v677_v43 = vstv %s3311_s28  ;;  %s2068_s28 = scalar_lea.sflag [#allocation3], %s375_s24 }
 0x191   : > { %v837_v49 = vpop.permute.xlu0 %836  ;;  %v903_v50 = vpop.permute.xlu1 %902 }
 0x192   : > { %v839_v8 = vadd.f32 %v837_v49, %v831_v29  ;;  %v905_v9 = vadd.f32 %v903_v50, %v897_v30  ;;  %v1281_v29 = vshrl.u32 %v387_v41, 7  ;;  %v3323_v41 = vld [vmem:[%s3528_s8] sm:$0x1]  ;;  %v678_v50 = vmul.f32 %v677_v43, %v3076_v38 }
 0x194   : > { %v1282_v4 = vsub.s32 0, %v1281_v29 }
 0x195   : > { %v969_v61 = vpop.permute.xlu0 %968  ;;  %v771_v62 = vpop.permute.xlu1 %770 }
 0x196   : > { %v971_v18 = vadd.f32 %v969_v61, %v963_v39  ;;  %v773_v30 = vadd.f32 %v771_v62, %v3261_v48 }
 0x199   : > { %v845_v12 = vpop.permute.xlu0 %844  ;;  %v911_v13 = vpop.permute.xlu1 %910 }
 0x19a   : > { %v847_v16 = vadd.f32 %v845_v12, %v839_v8  ;;  %v913_v17 = vadd.f32 %v911_v13, %v905_v9 }
 0x19c   : > { %v849_v20 = vmul.f32 0.01, %v847_v16  ;;  %v915_v21 = vmul.f32 0.01, %v913_v17  ;;  %vm914_vm10 = vcmp.gt.f32.partialorder %v913_v17, 0.0  ;;  %vm848_vm11 = vcmp.gt.f32.partialorder %v847_v16, 0.0 }
 0x19d   : > { %v1035_v22 = vpop.permute.xlu0 %1034  ;;  %v977_v23 = vpop.permute.xlu1 %976 }
 0x19e   : > { %v979_v24 = vadd.f32 %v977_v23, %v971_v18  ;;  %v916_v25 = vsel %vm914_vm10, %v913_v17, %v915_v21  ;;  %v850_v26 = vsel %vm848_vm11, %v847_v16, %v849_v20  ;;  %v1037_v31 = vadd.f32 %v1035_v22, %v3263_v0  ;;  %v2291_v17 = vld [vmem:[%s3527_s7] ss:$0 sm:$0xff] }
 0x19f   : > { %1058 = vrot.lane.b32.xlu1 %v916_v25, %s2768_s22  ;;  %1054 = vrot.lane.b32.xlu0 %v850_v26, %s2769_s23  ;;  %v1283_v0 = vrot.slane %v3323_v41, %v1282_v4  ;;  %vm1847_vm10 = vcmask 128005   ;;  %vm1520_vm11 = vcmask 124930  }
 0x1a0   : > { %v981_v32 = vmul.f32 0.01, %v979_v24  ;;  %vm980_vm12 = vcmp.gt.f32.partialorder %v979_v24, 0.0 }
 0x1a1   : > { %v779_v33 = vpop.permute.xlu0 %778  ;;  %v1043_v34 = vpop.permute.xlu1 %1042 }
 0x1a2   : > { %v781_v35 = vadd.f32 %v779_v33, %v773_v30  ;;  %v1045_v36 = vadd.f32 %v1043_v34, %v1037_v31  ;;  %v982_v1 = vsel %vm980_vm12, %v979_v24, %v981_v32  ;;  %v1271_v31 = vld [vmem:[%s3526_s6] sm:$0xff]  ;;  %v1272_v32 = vld [vmem:[%s3526_s6 + $0x8] sm:$0xff]  ;;  %vm1738_vm12 = vcmask 126980  }
 0x1a3   : > { %1062 = vrot.lane.b32.xlu0 %v982_v1, %s2770_s29  ;;  %v3350_v33 = vpack.c.bf16 %v1272_v32, %v1271_v31  ;;  %s2775_s29 = smov 112  }
 0x1a4   : > { %v783_v39 = vmul.f32 0.01, %v781_v35  ;;  %v1047_v40 = vmul.f32 0.01, %v1045_v36  ;;  %vm782_vm13 = vcmp.gt.f32.partialorder %v781_v35, 0.0  ;;  %vm1046_vm14 = vcmp.gt.f32.partialorder %v1045_v36, 0.0 }
 0x1a5   : > { %v665_v42 = vpop.permute.xlu0 %664  ;;  %v673_v48 = vpop.permute.xlu1 %672 }
 0x1a6   : > { %v667_v44 = vadd.f32 %v665_v42, %v659_v37  ;;  %v784_v45 = vsel %vm782_vm13, %v781_v35, %v783_v39  ;;  %v1048_v47 = vsel %vm1046_vm14, %v1045_v36, %v1047_v40  ;;  %vm1956_vm13 = vcmask 129030  }
 0x1a7   : > { %1050 = vrot.lane.b32.xlu1 %v784_v45, %s2771_s14  ;;  %1066 = vrot.lane.b32.xlu0 %v1048_v47, %s2772_s16  ;;  %s3360_s14 = scalar_lea.vmem [#allocation10], %s2193_s1  ;;  %s2302_s16 = sshll.u32 %s2848_s13, 7  ;;  %vm2065_vm14 = vcmask 130055  }
 0x1a8   : > { %v675_v49 = vadd.f32 %v673_v48, %v667_v44  ;;  %s2776_s13 = smov [#allocation10]  }
 0x1a9   : > { %v685_v52 = vpop.permute.xlu0 %684  ;;  %v693_v55 = vpop.permute.xlu1 %692  ;;  %s2686_s23 = sshll.u32 %s2776_s13, 4  ;;  %s2687_s23 = int_to_ptr.vmem [resolvable:$false] %s2686_s23 }
 0x1aa   : > { %v679_v51 = vadd.f32 %v678_v50, %v675_v49  ;;  %s2688_s17 = scalar_lea.vmem %s2687_s23, 256 }
 0x1ab   : > { %1284 = vrot.lane.b32.xlu1 %v1283_v0, %s2773_s27 }
 0x1ac   : > { %v687_v54 = vadd.f32 %v685_v52, %v679_v51 }
 0x1ad   : > { %v705_v60 = vpop.permute.xlu0 %704  ;;  %v713_v62 = vpop.permute.xlu1 %712 }
 0x1ae   : > { %v695_v56 = vadd.f32 %v693_v55, %v687_v54 }
 0x1b0   : > { %v699_v59 = vadd.f32 %v698_v58, %v695_v56 }
 0x1b2   : > { %v707_v61 = vadd.f32 %v705_v60, %v699_v59 }
 0x1b4   : > { %v715_v63 = vadd.f32 %v713_v62, %v707_v61 }
 0x1b6   : > { %v717_v2 = vmul.f32 0.01, %v715_v63  ;;  %vm716_vm1 = vcmp.gt.f32.partialorder %v715_v63, 0.0 }
 0x1b8   : > { %v718_v3 = vsel %vm716_vm1, %v715_v63, %v717_v2 }
 0x211   : > { %v1055_v15 = vpop.permute.xlu0 %1054  ;;  %v1059_v5 = vpop.permute.xlu1 %1058 }
 0x212   : > { %v1074_v6 = vsel %vm1073_vm15, %v1055_v15, %v1059_v5 }
 0x215   : > { %v1063_v38 = vpop.permute.xlu0 %1062 }
 0x216   : > { %v1076_v7 = vsel %vm1075_vm0, %v1074_v6, %v1063_v38 }
 0x219   : > { %v1051_v8 = vpop.permute.xlu1 %1050  ;;  %v1067_v9 = vpop.permute.xlu0 %1066 }
 0x21a   : > { %v1070_v10 = vsel %vm1069_vm2, %v718_v3, %v1051_v8  ;;  %2382 = vmatmul.mubr.msk.f32.vlgmr.msra.gmra.mrb[0].mxu1 %vm1124_vm3, %v1067_v9  ;;  %v1078_v57 = vsel %vm1077_vm4, %v1076_v7, %v1067_v9 }
 0x21b   : > { %1195 = vmatprep.mubr.f32.mxu0 %v1078_v57  ;;  %v1072_v12 = vsel %vm1071_vm5, %v1070_v10, %v1055_v15  ;;  %2388 = vmatprep.mubr.msk.f32.mxu1 %vm2766_vm9, %v2767_v11 }
 0x21c   : > { %1196 = vmatmul.mubr.f32.vlgmr.msra.gmra.mrb[0].mxu0 %v1072_v12  ;;  %2477 = vmatpush3.bf16.msra.mxu1 %v3350_v33 }
 0x21d   : > { %2423 = vmatprep.mubr.msk.f32.mxu0 %vm2766_vm9, %v2767_v11  ;;  %v1285_v26 = vpop.permute.xlu1 %1284  ;;  %2492 = vmatpush3.bf16.msra.mxu0 %v3350_v33 }
 0x21e   : > { %2478 = vmatprep.subr.bf16.mxu1 %v2764_v46 }
 0x2ed   : > { %v1267_v13 = vpop.f32.mrb[0].mxu1 }
 0x2ee   : > { %v2383_v14 = vpop.f32.mrb[1].mxu1 }
 0x2ef   : > { %v2338_v16 = vpop.f32.mrb[0].mxu0 }
 0x2f0   : > { %v2339_v18 = vpop.f32.mrb[1].mxu0 }
 0x2f1   : > { %v2340_v19 = vadd.f32 %v2339_v18, %v2338_v16 }
 0x2f3   : > { %v1198_v20 = vadd.f32 %v2340_v19, %v2291_v17 }
 0x2f5   : > { %v3338_v21 = vadd.f32 %v1267_v13, %v1198_v20 }
 0x2f7   : > { %v1274_v22 = vadd.f32 %v3323_v41, %v3338_v21 }
 0x2f9   : > { %v1275_v23 = vmul.f32 0.5, %v1274_v22 }
 0x2fb   : > { %2590 = vtanh.f32 %v1275_v23 }
 0x305   : > { %v2591_v24 = vpop.eup %2590 }
 0x306   : > { %v1277_v25 = vadd.f32 1.0, %v2591_v24 }
 0x308   : > { %v1278_v28 = vmul.f32 0.5, %v1277_v25 }
 0x30a   : > { %v1287_v27 = vmul.f32 %v1285_v26, %v1278_v28  ;;  %v1294_v35 = vsub.f32 1.0, %v1278_v28 }
 0x30c   : > { %1289 = vrot.lane.b32.xlu0 %v1287_v27, %s2774_s21 }
 0x37e   : > { %v1290_v29 = vpop.permute.xlu0 %1289 }
 0x37f   : > { %v1292_v30 = vadd.f32 %v1290_v29, %v3338_v21 }
 0x381   : > { %2592 = vtanh.f32 %v1292_v30 }
 0x38b   : > { %v2593_v34 = vpop.eup %2592 }
 0x38c   : > { %1296 = vrot.lane.b32.xlu1 %v2593_v34, %s2775_s29 }
 0x3fe   : > { %v1297_v36 = vpop.permute.xlu1 %1296 }
 0x3ff   : > { %v1299_v1 = vmul.f32 %v1297_v36, %v1294_v35 }
 0x401   : > { %1301 = vrot.lane.b32.xlu0 %v1299_v1, %s2775_s29  ;;  %v1403_v53 = vrot.slane %v1299_v1, 7 }
 0x473   : > { %v1302_v37 = vpop.permute.xlu0 %1301 }
 0x474   : > { %1305 = vst.msk [vmem:[%s3360_s14] sm:$0x1] %vm1304_vm6, %v1302_v37  ;;  %2389 = vmatmul.mubr.msk.f32.vlgmr.msra.gmra.mrb[2].mxu1 %vm1306_vm7, %v1302_v37 }
 0x475   : > { %2480 = vmatpush3.bf16.msra.mxu1 %v3350_v33  ;;  %2395 = vmatprep.mubr.msk.f32.mxu1 %vm2766_vm9, %v2767_v11 }
 0x476   : > { %2481 = vmatprep.subr.bf16.mxu1 %v2764_v46 }
 0x547   : > { %v1375_v4 = vpop.f32.mrb[2].mxu1 }
 0x548   : > { %v1376_v39 = vadd.f32 %v1375_v4, %v3323_v41  ;;  %v2390_v40 = vpop.f32.mrb[3].mxu1 }
 0x54a   : > { %v1380_v42 = vrot.slane %v1376_v39, 7 }
 0x54c   : > { %1387 = vrot.lane.b32.xlu1 %v1380_v42, %s2773_s27  ;;  %v1382_v43 = vadd.f32 %v1380_v42, %v3338_v21 }
 0x54e   : > { %v1383_v44 = vmul.f32 0.5, %v1382_v43 }
 0x550   : > { %2594 = vtanh.f32 %v1383_v44 }
 0x55a   : > { %v2595_v45 = vpop.eup %2594 }
 0x55b   : > { %v1385_v47 = vadd.f32 1.0, %v2595_v45 }
 0x55d   : > { %v1386_v48 = vmul.f32 0.5, %v1385_v47 }
 0x55f   : > { %v1397_v54 = vsub.f32 1.0, %v1386_v48  ;;  %v1405_v58 = vmul.f32 %v1403_v53, %v1386_v48 }
 0x5be   : > { %v1388_v0 = vpop.permute.xlu1 %1387 }
 0x5bf   : > { %v1390_v49 = vmul.f32 %v1388_v0, %v1386_v48 }
 0x5c1   : > { %1392 = vrot.lane.b32.xlu0 %v1390_v49, %s2774_s21 }
 0x633   : > { %v1393_v50 = vpop.permute.xlu0 %1392 }
 0x634   : > { %v1395_v51 = vadd.f32 %v1393_v50, %v3338_v21 }
 0x636   : > { %2596 = vtanh.f32 %v1395_v51 }
 0x640   : > { %v2597_v52 = vpop.eup %2596 }
 0x641   : > { %1399 = vrot.lane.b32.xlu1 %v2597_v52, %s2775_s29 }
 0x6b3   : > { %v1400_v55 = vpop.permute.xlu1 %1399 }
 0x6b4   : > { %v1402_v56 = vmul.f32 %v1400_v55, %v1397_v54 }
 0x6b6   : > { %v3374_v59 = vadd.f32 %v1405_v58, %v1402_v56 }
 0x6b8   : > { %v1413_v60 = vrot.slane %v3374_v59, 1  ;;  %v1512_v14 = vrot.slane %v3374_v59, 7 }
 0x6ba   : > { %1414 = vrot.lane.b32.xlu0 %v1413_v60, %s2775_s29 }
 0x72c   : > { %v1415_v61 = vpop.permute.xlu0 %1414 }
 0x72d   : > { %2396 = vmatmul.mubr.msk.f32.vlgmr.msra.gmra.mrb[4].mxu1 %vm1306_vm7, %v1415_v61 }
 0x72e   : > { %2483 = vmatpush3.bf16.msra.mxu1 %v3350_v33  ;;  %2402 = vmatprep.mubr.msk.f32.mxu1 %vm2766_vm9, %v2767_v11 }
 0x72f   : > { %2484 = vmatprep.subr.bf16.mxu1 %v2764_v46 }
 0x800   : > { %v1484_v62 = vpop.f32.mrb[4].mxu1 }
 0x801   : > { %v1485_v63 = vadd.f32 %v1484_v62, %v3323_v41  ;;  %v2397_v15 = vpop.f32.mrb[5].mxu1 }
 0x803   : > { %v1489_v2 = vrot.slane %v1485_v63, 6 }
 0x805   : > { %1496 = vrot.lane.b32.xlu1 %v1489_v2, %s2773_s27  ;;  %v1491_v5 = vadd.f32 %v1489_v2, %v3338_v21 }
 0x807   : > { %v1492_v38 = vmul.f32 0.5, %v1491_v5 }
 0x809   : > { %2598 = vtanh.f32 %v1492_v38 }
 0x813   : > { %v2599_v6 = vpop.eup %2598 }
 0x814   : > { %v1494_v7 = vadd.f32 1.0, %v2599_v6 }
 0x816   : > { %v1495_v8 = vmul.f32 0.5, %v1494_v7 }
 0x818   : > { %v1506_v13 = vsub.f32 1.0, %v1495_v8  ;;  %v1514_v17 = vmul.f32 %v1512_v14, %v1495_v8 }
 0x877   : > { %v1497_v3 = vpop.permute.xlu1 %1496 }
 0x878   : > { %v1499_v9 = vmul.f32 %v1497_v3, %v1495_v8 }
 0x87a   : > { %1501 = vrot.lane.b32.xlu0 %v1499_v9, %s2774_s21 }
 0x8ec   : > { %v1502_v10 = vpop.permute.xlu0 %1501 }
 0x8ed   : > { %v1504_v57 = vadd.f32 %v1502_v10, %v3338_v21 }
 0x8ef   : > { %2600 = vtanh.f32 %v1504_v57 }
 0x8f9   : > { %v2601_v12 = vpop.eup %2600 }
 0x8fa   : > { %1508 = vrot.lane.b32.xlu1 %v2601_v12, %s2775_s29 }
 0x96c   : > { %v1509_v16 = vpop.permute.xlu1 %1508 }
 0x96d   : > { %v1511_v18 = vmul.f32 %v1509_v16, %v1506_v13 }
 0x96f   : > { %v3390_v19 = vadd.f32 %v1514_v17, %v1511_v18 }
 0x971   : > { %v1522_v20 = vrot.slane %v3390_v19, 2  ;;  %v1621_v4 = vrot.slane %v3390_v19, 7 }
 0x973   : > { %1523 = vrot.lane.b32.xlu0 %v1522_v20, %s2775_s29 }
 0x9e5   : > { %v1524_v22 = vpop.permute.xlu0 %1523 }
 0x9e6   : > { %2403 = vmatmul.mubr.msk.f32.vlgmr.msra.gmra.mrb[6].mxu1 %vm1306_vm7, %v1524_v22 }
 0x9e7   : > { %2486 = vmatpush3.bf16.msra.mxu1 %v3350_v33  ;;  %2409 = vmatprep.mubr.msk.f32.mxu1 %vm2766_vm9, %v2767_v11 }
 0x9e8   : > { %2487 = vmatprep.subr.bf16.mxu1 %v2764_v46 }
 0xab9   : > { %v1593_v23 = vpop.f32.mrb[6].mxu1 }
 0xaba   : > { %v1594_v24 = vadd.f32 %v1593_v23, %v3323_v41  ;;  %v2404_v25 = vpop.f32.mrb[7].mxu1 }
 0xabc   : > { %v1598_v26 = vrot.slane %v1594_v24, 5 }
 0xabe   : > { %1605 = vrot.lane.b32.xlu1 %v1598_v26, %s2773_s27  ;;  %v1600_v28 = vadd.f32 %v1598_v26, %v3338_v21 }
 0xac0   : > { %v1601_v27 = vmul.f32 0.5, %v1600_v28 }
 0xac2   : > { %2602 = vtanh.f32 %v1601_v27 }
 0xacc   : > { %v2603_v29 = vpop.eup %2602 }
 0xacd   : > { %v1603_v30 = vadd.f32 1.0, %v2603_v29 }
 0xacf   : > { %v1604_v31 = vmul.f32 0.5, %v1603_v30 }
 0xad1   : > { %v1615_v37 = vsub.f32 1.0, %v1604_v31  ;;  %v1623_v40 = vmul.f32 %v1621_v4, %v1604_v31 }
 0xb30   : > { %v1606_v32 = vpop.permute.xlu1 %1605 }
 0xb31   : > { %v1608_v34 = vmul.f32 %v1606_v32, %v1604_v31 }
 0xb33   : > { %1610 = vrot.lane.b32.xlu0 %v1608_v34, %s2774_s21 }
 0xba5   : > { %v1611_v35 = vpop.permute.xlu0 %1610 }
 0xba6   : > { %v1613_v36 = vadd.f32 %v1611_v35, %v3338_v21 }
 0xba8   : > { %2604 = vtanh.f32 %v1613_v36 }
 0xbb2   : > { %v2605_v1 = vpop.eup %2604 }
 0xbb3   : > { %1617 = vrot.lane.b32.xlu1 %v2605_v1, %s2775_s29 }
 0xc25   : > { %v1618_v39 = vpop.permute.xlu1 %1617 }
 0xc26   : > { %v1620_v42 = vmul.f32 %v1618_v39, %v1615_v37 }
 0xc28   : > { %v3406_v43 = vadd.f32 %v1623_v40, %v1620_v42 }
 0xc2a   : > { %v1631_v44 = vrot.slane %v3406_v43, 3  ;;  %v1730_v62 = vrot.slane %v3406_v43, 7 }
 0xc2c   : > { %1632 = vrot.lane.b32.xlu0 %v1631_v44, %s2775_s29 }
 0xc9e   : > { %v1633_v45 = vpop.permute.xlu0 %1632 }
 0xc9f   : > { %2410 = vmatmul.mubr.msk.f32.vlgmr.msra.gmra.mrb[8].mxu1 %vm1306_vm7, %v1633_v45 }
 0xca0   : > { %2489 = vmatpush3.bf16.msra.mxu1 %v3350_v33  ;;  %2416 = vmatprep.mubr.msk.f32.mxu1 %vm2766_vm9, %v2767_v11 }
 0xca1   : > { %2493 = vmatprep.subr.bf16.mxu1 %v2764_v46 }
 0xd72   : > { %v1702_v47 = vpop.f32.mrb[8].mxu1 }
 0xd73   : > { %v1703_v48 = vadd.f32 %v1702_v47, %v3323_v41  ;;  %v2411_v0 = vpop.f32.mrb[9].mxu1 }
 0xd75   : > { %v1707_v49 = vrot.slane %v1703_v48, 4 }
 0xd77   : > { %1714 = vrot.lane.b32.xlu1 %v1707_v49, %s2773_s27  ;;  %v1709_v50 = vadd.f32 %v1707_v49, %v3338_v21 }
 0xd79   : > { %v1710_v51 = vmul.f32 0.5, %v1709_v50 }
 0xd7b   : > { %2606 = vtanh.f32 %v1710_v51 }
 0xd85   : > { %v2607_v52 = vpop.eup %2606 }
 0xd86   : > { %v1712_v53 = vadd.f32 1.0, %v2607_v52 }
 0xd88   : > { %v1713_v54 = vmul.f32 0.5, %v1712_v53 }
 0xd8a   : > { %v1724_v61 = vsub.f32 1.0, %v1713_v54  ;;  %v1732_v15 = vmul.f32 %v1730_v62, %v1713_v54 }
 0xde9   : > { %v1715_v55 = vpop.permute.xlu1 %1714 }
 0xdea   : > { %v1717_v56 = vmul.f32 %v1715_v55, %v1713_v54 }
 0xdec   : > { %1719 = vrot.lane.b32.xlu0 %v1717_v56, %s2774_s21 }
 0xe5e   : > { %v1720_v58 = vpop.permute.xlu0 %1719 }
 0xe5f   : > { %v1722_v46 = vadd.f32 %v1720_v58, %v3338_v21 }
 0xe61   : > { %2608 = vtanh.f32 %v1722_v46 }
 0xe6b   : > { %v2609_v60 = vpop.eup %2608 }
 0xe6c   : > { %1726 = vrot.lane.b32.xlu1 %v2609_v60, %s2775_s29 }
 0xede   : > { %v1727_v63 = vpop.permute.xlu1 %1726 }
 0xedf   : > { %v1729_v2 = vmul.f32 %v1727_v63, %v1724_v61 }
 0xee1   : > { %v3422_v5 = vadd.f32 %v1732_v15, %v1729_v2 }
 0xee3   : > { %v1740_v38 = vrot.slane %v3422_v5, 4  ;;  %v1839_v22 = vrot.slane %v3422_v5, 7 }
 0xee5   : > { %1741 = vrot.lane.b32.xlu0 %v1740_v38, %s2775_s29 }
 0xf57   : > { %v1742_v6 = vpop.permute.xlu0 %1741 }
 0xf58   : > { %2417 = vmatmul.mubr.msk.f32.vlgmr.msra.gmra.mrb[10].mxu1 %vm1306_vm7, %v1742_v6 }
 0xf59   : > { %2495 = vmatpush3.bf16.msra.mxu1 %v3350_v33  ;;  %2430 = vmatprep.mubr.msk.f32.mxu1 %vm2766_vm9, %v2767_v11  ;;  %vm1629_vm9 = vcmask 125955  }
0x102b   : > { %v1811_v7 = vpop.f32.mrb[10].mxu1 }
0x102c   : > { %v1812_v8 = vadd.f32 %v1811_v7, %v3323_v41  ;;  %v2418_v3 = vpop.f32.mrb[11].mxu1 }
0x102e   : > { %v1816_v9 = vrot.slane %v1812_v8, 3 }
0x1030   : > { %1823 = vrot.lane.b32.xlu1 %v1816_v9, %s2773_s27  ;;  %v1818_v10 = vadd.f32 %v1816_v9, %v3338_v21 }
0x1032   : > { %v1819_v57 = vmul.f32 0.5, %v1818_v10 }
0x1034   : > { %2610 = vtanh.f32 %v1819_v57 }
0x103e   : > { %v2611_v12 = vpop.eup %2610 }
0x103f   : > { %v1821_v13 = vadd.f32 1.0, %v2611_v12 }
0x1041   : > { %v1822_v14 = vmul.f32 0.5, %v1821_v13 }
0x1043   : > { %v1833_v20 = vsub.f32 1.0, %v1822_v14  ;;  %v1841_v24 = vmul.f32 %v1839_v22, %v1822_v14 }
0x10a2   : > { %v1824_v16 = vpop.permute.xlu1 %1823 }
0x10a3   : > { %v1826_v17 = vmul.f32 %v1824_v16, %v1822_v14 }
0x10a5   : > { %1828 = vrot.lane.b32.xlu0 %v1826_v17, %s2774_s21 }
0x1117   : > { %v1829_v33 = vpop.permute.xlu0 %1828 }
0x1118   : > { %v1831_v11 = vadd.f32 %v1829_v33, %v3338_v21 }
0x111a   : > { %2612 = vtanh.f32 %v1831_v11 }
0x1124   : > { %v2613_v18 = vpop.eup %2612 }
0x1125   : > { %1835 = vrot.lane.b32.xlu1 %v2613_v18, %s2775_s29 }
0x1197   : > { %v1836_v23 = vpop.permute.xlu1 %1835 }
0x1198   : > { %v1838_v25 = vmul.f32 %v1836_v23, %v1833_v20 }
0x119a   : > { %v1842_v26 = vadd.f32 %v1841_v24, %v1838_v25 }
0x119c   : > { %v1849_v28 = vrot.slane %v1842_v26, 5  ;;  %v1948_v47 = vrot.slane %v1842_v26, 7 }
0x119e   : > { %1850 = vrot.lane.b32.xlu0 %v1849_v28, %s2775_s29 }
0x1210   : > { %v1851_v27 = vpop.permute.xlu0 %1850 }
0x1211   : > { %2424 = vmatmul.mubr.msk.f32.vlgmr.msra.gmra.mrb[2].mxu0 %vm1306_vm7, %v1851_v27 }
0x12e4   : > { %v1920_v29 = vpop.f32.mrb[2].mxu0 }
0x12e5   : > { %v1921_v30 = vadd.f32 %v1920_v29, %v3323_v41  ;;  %v2425_v31 = vpop.f32.mrb[3].mxu0 }
0x12e7   : > { %v1925_v32 = vrot.slane %v1921_v30, 2 }
0x12e9   : > { %1932 = vrot.lane.b32.xlu1 %v1925_v32, %s2773_s27  ;;  %v1927_v34 = vadd.f32 %v1925_v32, %v3338_v21 }
0x12eb   : > { %v1928_v35 = vmul.f32 0.5, %v1927_v34 }
0x12ed   : > { %2614 = vtanh.f32 %v1928_v35 }
0x12f7   : > { %v2615_v36 = vpop.eup %2614 }
0x12f8   : > { %v1930_v1 = vadd.f32 1.0, %v2615_v36 }
0x12fa   : > { %v1931_v37 = vmul.f32 0.5, %v1930_v1 }
0x12fc   : > { %v1942_v45 = vsub.f32 1.0, %v1931_v37  ;;  %v1950_v0 = vmul.f32 %v1948_v47, %v1931_v37 }
0x135b   : > { %v1933_v4 = vpop.permute.xlu1 %1932 }
0x135c   : > { %v1935_v39 = vmul.f32 %v1933_v4, %v1931_v37 }
0x135e   : > { %1937 = vrot.lane.b32.xlu0 %v1935_v39, %s2774_s21 }
0x13d0   : > { %v1938_v40 = vpop.permute.xlu0 %1937 }
0x13d1   : > { %v1940_v42 = vadd.f32 %v1938_v40, %v3338_v21 }
0x13d3   : > { %2616 = vtanh.f32 %v1940_v42 }
0x13dd   : > { %v2617_v44 = vpop.eup %2616 }
0x13de   : > { %1944 = vrot.lane.b32.xlu1 %v2617_v44, %s2775_s29 }
0x1450   : > { %v1945_v48 = vpop.permute.xlu1 %1944 }
0x1451   : > { %v1947_v49 = vmul.f32 %v1945_v48, %v1942_v45 }
0x1453   : > { %v1951_v50 = vadd.f32 %v1950_v0, %v1947_v49 }
0x1455   : > { %v1958_v51 = vrot.slane %v1951_v50, 6 }
0x1457   : > { %1959 = vrot.lane.b32.xlu0 %v1958_v51, %s2775_s29 }
0x14c9   : > { %v1960_v52 = vpop.permute.xlu0 %1959 }
0x14ca   : > { %2431 = vmatmul.mubr.msk.f32.vlgmr.msra.gmra.mrb[12].mxu1 %vm1306_vm7, %v1960_v52 }
0x159d   : > { %v2029_v53 = vpop.f32.mrb[12].mxu1 }
0x159e   : > { %v2030_v54 = vadd.f32 %v2029_v53, %v3323_v41  ;;  %v2432_v55 = vpop.f32.mrb[13].mxu1 }
0x15a0   : > { %v2034_v56 = vrot.slane %v2030_v54, 1 }
0x15a2   : > { %2041 = vrot.lane.b32.xlu1 %v2034_v56, %s2773_s27  ;;  %v2036_v58 = vadd.f32 %v2034_v56, %v3338_v21  ;;  %s2081_s27 = sshll.u32 %s3360_s14, 4  ;;  %s3477_s27 = int_to_ptr.vmem [resolvable:$true] %s2081_s27 }
0x15a3   : > { %s2682_s22 = scalar_lea.vmem %s3477_s27, 128  ;;  %p2689_p2 = scmp.lt.s32.totalorder %s3477_s27, %s2687_s23 }
0x15a4   : > { %v2037_v46 = vmul.f32 0.5, %v2036_v58  ;;  %p2683_p8 = scmp.ne.s32.totalorder %s3477_s27, %s2682_s22  ;;  %p2690_p3 = scmp.lt.s32.totalorder %s2688_s17, %s2682_s22 }
0x15a6   : > { %2618 = vtanh.f32 %v2037_v46  ;;  %p2684_p13 = pnand %p2683_p8, %p3548_p11  ;;  %p2691_p4 = por %p2690_p3, %p2689_p2 }
0x15a8   : > { %p2685_p1 = pneg %p2684_p13 }
0x15aa   : > { %p2692_p9 = pnand %p2691_p4, %p2685_p1 }
0x15b0   : > { %v2619_v60 = vpop.eup %2618 }
0x15b1   : > { %v2039_v61 = vadd.f32 1.0, %v2619_v60 }
0x15b3   : > { %v2040_v62 = vmul.f32 0.5, %v2039_v61 }
0x1614   : > { %v2042_v63 = vpop.permute.xlu1 %2041 }
0x1615   : > { %v2044_v15 = vmul.f32 %v2042_v63, %v2040_v62 }
0x1617   : > { %2046 = vrot.lane.b32.xlu0 %v2044_v15, %s2774_s21  ;;  %s3475_s21 = scalar_lea.hbm %s3529_s9, %s2302_s16 }
0x161b   : > { %1408 = vrot.lane.b32.xlu0 %v3374_v59, %s2775_s29  ;;  %v2057_v59 = vrot.slane %v1951_v50, 7 }
0x161d   : > { %v2059_v3 = vmul.f32 %v2057_v59, %v2040_v62 }
0x161f   : > { %1626 = vrot.lane.b32.xlu0 %v3406_v43, %s2775_s29 }
0x1623   : > { %1844 = vrot.lane.b32.xlu0 %v1842_v26, %s2775_s29 }
0x1689   : > { %v2047_v41 = vpop.permute.xlu0 %2046 }
0x168a   : > { %v2049_v2 = vadd.f32 %v2047_v41, %v3338_v21  ;;  %v2051_v21 = vsub.f32 1.0, %v2040_v62 }
0x168c   : > { %2620 = vtanh.f32 %v2049_v2 }
0x168d   : > { %v1409_v38 = vpop.permute.xlu0 %1408 }
0x168e   : > { %1412 = vst.msk [vmem:[%s3360_s14] sm:$0x2] %vm1411_vm8, %v1409_v38 }
0x1691   : > { %v1627_v6 = vpop.permute.xlu0 %1626 }
0x1692   : > { %1630 = vst.msk [vmem:[%s3360_s14] sm:$0x8] %vm1629_vm9, %v1627_v6 }
0x1695   : > { %v1845_v7 = vpop.permute.xlu0 %1844 }
0x1696   : > { %v2621_v8 = vpop.eup %2620  ;;  %1848 = vst.msk [vmem:[%s3360_s14] sm:$0x20] %vm1847_vm10, %v1845_v7 }
0x1697   : > { %2053 = vrot.lane.b32.xlu1 %v2621_v8, %s2775_s29 }
0x169b   : > { %1517 = vrot.lane.b32.xlu1 %v3390_v19, %s2775_s29 }
0x169f   : > { %1735 = vrot.lane.b32.xlu1 %v3422_v5, %s2775_s29 }
0x16a3   : > { %1953 = vrot.lane.b32.xlu1 %v1951_v50, %s2775_s29 }
0x1709   : > { %v2054_v43 = vpop.permute.xlu1 %2053 }
0x170a   : > { %v2056_v9 = vmul.f32 %v2054_v43, %v2051_v21 }
0x170c   : > { %v2060_v10 = vadd.f32 %v2059_v3, %v2056_v9 }
0x170d   : > { %v1518_v57 = vpop.permute.xlu1 %1517 }
0x170e   : > { %1521 = vst.msk [vmem:[%s3360_s14] sm:$0x4] %vm1520_vm11, %v1518_v57  ;;  %2062 = vrot.lane.b32.xlu0 %v2060_v10, %s2775_s29 }
0x1711   : > { %v1736_v19 = vpop.permute.xlu1 %1735 }
0x1712   : > { %1739 = vst.msk [vmem:[%s3360_s14] sm:$0x10] %vm1738_vm12, %v1736_v19 }
0x1715   : > { %v1954_v5 = vpop.permute.xlu1 %1953 }
0x1716   : > { %1957 = vst.msk [vmem:[%s3360_s14] sm:$0x40] %vm1956_vm13, %v1954_v5 }
0x1780   : > { %v2063_v12 = vpop.permute.xlu0 %2062 }
0x1781   : > { %2066 = vst.msk [vmem:[%s3360_s14] sm:$0x80] %vm2065_vm14, %v2063_v12 }
0x1782   : > { %2695 = shalt.err (!%p2692_p9)
}
0x1783   : > { %s2696_s29 = scalar_lea.hbm %s3475_s21, 128  ;;  %s2700_s14 = scalar_lea.hbm %s3529_s9, 256 }
0x1784   : > { %p2697_p7 = scmp.ne.s32.totalorder %s3475_s21, %s2696_s29  ;;  %p2701_p6 = scmp.lt.u32.totalorder %s3475_s21, %s3529_s9 }
0x1785   : > { %p2702_p12 = scmp.lt.u32.totalorder %s2700_s14, %s2696_s29  ;;  %p2704_p8 = scmp.lt.u32.totalorder %s2696_s29, %s3475_s21 }
0x1786   : > { %p2698_p0 = pnand %p2697_p7, %p3548_p11 }
0x1787   : > { %p2703_p10 = por %p2702_p12, %p2701_p6 }
0x1788   : > { %p2699_p5 = pneg %p2698_p0 }
0x1789   : > { %p2705_p13 = por %p2704_p8, %p2703_p10 }
0x178b   : > { %p2706_p1 = pnand %p2705_p13, %p2699_p5 }
0x178d   : > { %2709 = shalt.err (!%p2706_p1)
}
0x178e   : > { %2512 = dma.vmem_to_hbm [thread:$0]  (%p3548_p11), %s3477_s27, 128, %s3475_s21, %s2068_s28  }
0x178f PF: > { %p2539_p2 = scmp.ge.s32.totalorder %s2756_s12, 2  ;;  %s2093_s26 = sand.u32 1, %s2744_s30  }
0x1790   : > { %p3549_p3 = scmp.ne.s32.totalorder %s3535_s20, 0  ;;  %s2094_s22 = scalar_lea.sflag [#allocation3], %s2093_s26 }
0x1792   : > { %p2528_p4 = pnand %p2539_p2, %p3549_p3 }
0x1794   : > { %2739 = dma.done.wait (!%p2528_p4), %s2094_s22, 128  }
0x1795   : > { %2741 = vsyncadd (!%p2528_p4), %s2094_s22, 4294967168  ;;  %p22_p9 = scmp.ge.s32.totalorder %s2852_s15, 4   ;;  %s3550_s30 = smov %s2748_s10 }
0x1796   : > { %s3551_s10 = smov %s2752_s11  ;;  %s3552_s11 = smov %s2863_s18 }
0x1797   : > { %s3553_s12 = smov %s2852_s15  ;;  %24 = sbr.rel (!%p22_p9) target bundleno = 8 (0x8), region = 108 }
0x179e   :  { %2099 = vsyncpa [#allocation3], 1 }
0x179f   :  { %2101 = vsyncpa [#allocation3 + $0x1], 1 }
0x17a0   :  { %2102 = vsyncpa [#allocation4], 1 }
0x17a1   :  { %2104 = vsyncpa [#allocation4 + $0x1], 1 }
0x17a2   :  { %2105 = vsyncpa [#allocation6], 1 }
0x17a3   :  { %2106 = vsyncpa [#allocation9], 1 }

</bundles_post_ra>
